<compile_context>
chip_gen: v7x
topology: tpu7x:2x2x1
jax: 0.10.0
libtpu: 0.0.40
codegen_flags: <defaults>
</compile_context>

<pallas_src>
import math

import jax
import jax.numpy as jnp
from jax.experimental import pallas as pl
from jax.experimental.pallas import tpu as pltpu


def _round_up(x, m):
    return (x + m - 1) // m * m


def position_net_kernel(x_ref, fcoef_ref, off_ref,
                        w1_ref, b1_ref, w2_ref, b2_ref, w3_ref, b3_ref,
                        o_ref):
    # ---- fused Fourier embedding (VPU muls + EUP sin) ----
    x = x_ref[...]                       # (tm, 4) f32 box coords
    fcoef = fcoef_ref[...]               # (4, 64): row c holds freqs on cols with j % 4 == c
    phase = off_ref[...]                 # (1, 64): +pi/2 on the cos columns
    for c in range(4):                   # 4 broadcast mul-adds, fully unrolled
        phase = phase + x[:, c:c + 1] * fcoef[c:c + 1, :]
    emb = jnp.sin(phase)                 # (tm, 64); sin(t + pi/2) == cos(t)

    # ---- 3-layer MLP: bf16 operands, f32 accumulation on the MXU ----
    h = jnp.dot(emb.astype(jnp.bfloat16), w1_ref[...],
                preferred_element_type=jnp.float32) + b1_ref[...]
    h = h * jax.nn.sigmoid(h)            # SiLU in f32
    h = jnp.dot(h.astype(jnp.bfloat16), w2_ref[...],
                preferred_element_type=jnp.float32) + b2_ref[...]
    h = h * jax.nn.sigmoid(h)
    o = jnp.dot(h.astype(jnp.bfloat16), w3_ref[...],
                preferred_element_type=jnp.float32) + b3_ref[...]
    o_ref[...] = o.astype(o_ref.dtype)


def init_position_net_params(key, out_dim, fourier_freqs=8, hidden=512):
    """Synthetic params mirroring nn.Linear shapes (stored transposed: (in, out))."""
    position_dim = fourier_freqs * 2 * 4  # 64
    ks = jax.random.split(key, 6)

    def lin(kw, kb, fan_in, fan_out):
        bound = 1.0 / math.sqrt(fan_in)
        w = jax.random.uniform(kw, (fan_in, fan_out), jnp.float32, -bound, bound)
        b = jax.random.uniform(kb, (1, fan_out), jnp.float32, -bound, bound)
        return w, b

    w1, b1 = lin(ks[0], ks[1], position_dim, hidden)
    w2, b2 = lin(ks[2], ks[3], hidden, hidden)
    w3, b3 = lin(ks[4], ks[5], hidden, out_dim)
    return (w1, b1, w2, b2, w3, b3)


def position_net_forward(boxes, params, *, fourier_freqs=8, temperature=100.0, tm=256):
    B, N, C = boxes.shape
    assert C == 4, "PositionNet expects xyxy boxes (last dim == 4)"
    M = B * N
    position_dim = fourier_freqs * 2 * 4  # 64

    w1, b1, w2, b2, w3, b3 = params
    out_dim = w3.shape[1]

    # bf16 operands for the MXU (f32 accumulate requested in the kernel).
    # In production these casts/pads would be done once at load time.
    w1b = w1.astype(jnp.bfloat16)
    w2b = w2.astype(jnp.bfloat16)

    # Lane-dense output: pad out_dim (and w3/b3) up to a multiple of 128.
    out_pad = _round_up(out_dim, 128)
    w3b = jnp.zeros((w3.shape[0], out_pad), jnp.bfloat16).at[:, :out_dim].set(
        w3.astype(jnp.bfloat16))
    b3p = jnp.zeros((1, out_pad), jnp.float32).at[:, :out_dim].set(b3)

    # Row tiling: fixed tile (sweepable), pad M, parallel row grid.
    tm = min(tm, _round_up(M, 8))
    M_pad = _round_up(M, tm)
    x = boxes.reshape(M, 4).astype(jnp.float32)
    if M_pad != M:
        x = jnp.pad(x, ((0, M_pad - M), (0, 0)))

    # Fourier phase tables. Column j = 8*i + 4*s + c (i = freq, s = sin/cos, c = coord).
    j = jnp.arange(position_dim)
    freqs = temperature ** (jnp.arange(fourier_freqs, dtype=jnp.float32) / fourier_freqs)
    fcoef = ((jnp.arange(4)[:, None] == (j % 4)[None, :]).astype(jnp.float32)
             * freqs[j // 8][None, :])                          # (4, 64)
    off = (((j // 4) % 2) == 1).astype(jnp.float32)[None, :] * (math.pi / 2.0)  # (1, 64)

    grid = (M_pad // tm,)
    # Note: weight BlockSpecs have constant index maps (resident across the grid);
    # pl.Buffered(1) would shave their second pipeline buffer but is skipped here
    # for compile robustness (VMEM footprint is already tiny: ~0.7 MiB of weights).
    out = pl.pallas_call(
        position_net_kernel,
        out_shape=jax.ShapeDtypeStruct((M_pad, out_pad), jnp.float32),
        grid_spec=pltpu.PrefetchScalarGridSpec(
            num_scalar_prefetch=0,
            grid=grid,
            in_specs=[
                pl.BlockSpec((tm, 4), lambda i: (i, 0)),        # boxes row tile
                pl.BlockSpec(fcoef.shape, lambda i: (0, 0)),    # (4, 64) freq table
                pl.BlockSpec(off.shape, lambda i: (0, 0)),      # (1, 64) cos offsets
                pl.BlockSpec(w1b.shape, lambda i: (0, 0)),      # resident weights
                pl.BlockSpec(b1.shape, lambda i: (0, 0)),
                pl.BlockSpec(w2b.shape, lambda i: (0, 0)),
                pl.BlockSpec(b2.shape, lambda i: (0, 0)),
                pl.BlockSpec(w3b.shape, lambda i: (0, 0)),
                pl.BlockSpec(b3p.shape, lambda i: (0, 0)),
            ],
            out_specs=pl.BlockSpec((tm, out_pad), lambda i: (i, 0)),
        ),
        compiler_params=pltpu.CompilerParams(
            dimension_semantics=("parallel",)),
    )(x, fcoef, off, w1b, b1, w2b, b2, w3b, b3p)

    return out[:M, :out_dim].reshape(B, N, out_dim)


def position_net_reference(boxes, params, *, fourier_freqs=8, temperature=100.0):
    """Pure-JAX f32 reference mirroring the PyTorch forward exactly."""
    freqs = temperature ** (jnp.arange(fourier_freqs, dtype=jnp.float32) / fourier_freqs)
    parts = []
    for i in range(fourier_freqs):
        parts.append(jnp.sin(freqs[i] * boxes))
        parts.append(jnp.cos(freqs[i] * boxes))
    emb = jnp.concatenate(parts, axis=-1)                       # (B, N, 64)
    w1, b1, w2, b2, w3, b3 = params
    h = jax.nn.silu(emb @ w1 + b1[0])
    h = jax.nn.silu(h @ w2 + b2[0])
    return h @ w3 + b3[0]


if __name__ == "__main__":
    key = jax.random.PRNGKey(0)
    k_boxes, k_params = jax.random.split(key)

    B, N = 2, 8          # 2 images, 8 boxes each -> 16 token rows
    out_dim = 32         # small out_dim for the synthetic test
    boxes = jax.random.uniform(k_boxes, (B, N, 4), jnp.float32)  # xyxy in [0, 1)

    params = init_position_net_params(k_params, out_dim)

    out = position_net_forward(boxes, params)
    out = jax.block_until_ready(out)

    ref = position_net_reference(boxes, params)
    assert out.shape == (B, N, out_dim)
    # bf16 MXU operands with f32 accumulation -> ~1e-2-scale tolerance vs f32 ref.
    assert jnp.allclose(out, ref, atol=2e-2, rtol=2e-2), "mismatch vs reference"

    print("KERNEL_OK")
</pallas_src>

<mosaic_0001>
module attributes {stable_mosaic.version = 11 : i64} {
  func.func @position_net_kernel(%arg0: i32, %arg1: memref<16x4xf32, #tpu.memory_space<vmem>>, %arg2: memref<4x64xf32, #tpu.memory_space<vmem>>, %arg3: memref<1x64xf32, #tpu.memory_space<vmem>>, %arg4: memref<64x512xbf16, #tpu.memory_space<vmem>>, %arg5: memref<1x512xf32, #tpu.memory_space<vmem>>, %arg6: memref<512x512xbf16, #tpu.memory_space<vmem>>, %arg7: memref<1x512xf32, #tpu.memory_space<vmem>>, %arg8: memref<512x128xbf16, #tpu.memory_space<vmem>>, %arg9: memref<1x128xf32, #tpu.memory_space<vmem>>, %arg10: memref<16x128xf32, #tpu.memory_space<vmem>>) attributes {dimension_semantics = [#tpu.dimension_semantics<parallel>], iteration_bounds = array<i64: 1>, scalar_prefetch = 0 : i64, scratch_operands = 0 : i64, tpu.core_type = #tpu.core_type<tc>, window_params = [{transform_indices = @transform_0, window_bounds = array<i64: 16, 4>}, {pipeline_mode = #tpu.pipeline_mode<synchronous>, transform_indices = @transform_1, window_bounds = array<i64: 4, 64>}, {pipeline_mode = #tpu.pipeline_mode<synchronous>, transform_indices = @transform_2, window_bounds = array<i64: 1, 64>}, {pipeline_mode = #tpu.pipeline_mode<synchronous>, transform_indices = @transform_3, window_bounds = array<i64: 64, 512>}, {pipeline_mode = #tpu.pipeline_mode<synchronous>, transform_indices = @transform_4, window_bounds = array<i64: 1, 512>}, {pipeline_mode = #tpu.pipeline_mode<synchronous>, transform_indices = @transform_5, window_bounds = array<i64: 512, 512>}, {pipeline_mode = #tpu.pipeline_mode<synchronous>, transform_indices = @transform_6, window_bounds = array<i64: 1, 512>}, {pipeline_mode = #tpu.pipeline_mode<synchronous>, transform_indices = @transform_7, window_bounds = array<i64: 512, 128>}, {pipeline_mode = #tpu.pipeline_mode<synchronous>, transform_indices = @transform_8, window_bounds = array<i64: 1, 128>}, {transform_indices = @transform_9, window_bounds = array<i64: 16, 128>}]} {
    %c0 = arith.constant 0 : index
    %c0_0 = arith.constant 0 : index
    %0 = vector.load %arg1[%c0, %c0_0] : memref<16x4xf32, #tpu.memory_space<vmem>>, vector<16x4xf32>
    %c0_1 = arith.constant 0 : index
    %c0_2 = arith.constant 0 : index
    %1 = vector.load %arg2[%c0_1, %c0_2] : memref<4x64xf32, #tpu.memory_space<vmem>>, vector<4x64xf32>
    %c0_3 = arith.constant 0 : index
    %c0_4 = arith.constant 0 : index
    %2 = vector.load %arg3[%c0_3, %c0_4] : memref<1x64xf32, #tpu.memory_space<vmem>>, vector<1x64xf32>
    %3 = vector.extract_strided_slice %0 {offsets = [0, 0], sizes = [16, 1], strides = [1, 1]} : vector<16x4xf32> to vector<16x1xf32>
    %4 = vector.extract_strided_slice %1 {offsets = [0, 0], sizes = [1, 64], strides = [1, 1]} : vector<4x64xf32> to vector<1x64xf32>
    %5 = vector.broadcast %3 : vector<16x1xf32> to vector<16x64xf32>
    %6 = vector.broadcast %4 : vector<1x64xf32> to vector<16x64xf32>
    %7 = arith.mulf %5, %6 : vector<16x64xf32>
    %8 = vector.broadcast %2 : vector<1x64xf32> to vector<16x64xf32>
    %9 = arith.addf %8, %7 : vector<16x64xf32>
    %10 = vector.extract_strided_slice %0 {offsets = [0, 1], sizes = [16, 1], strides = [1, 1]} : vector<16x4xf32> to vector<16x1xf32>
    %11 = vector.extract_strided_slice %1 {offsets = [1, 0], sizes = [1, 64], strides = [1, 1]} : vector<4x64xf32> to vector<1x64xf32>
    %12 = vector.broadcast %10 : vector<16x1xf32> to vector<16x64xf32>
    %13 = vector.broadcast %11 : vector<1x64xf32> to vector<16x64xf32>
    %14 = arith.mulf %12, %13 : vector<16x64xf32>
    %15 = arith.addf %9, %14 : vector<16x64xf32>
    %16 = vector.extract_strided_slice %0 {offsets = [0, 2], sizes = [16, 1], strides = [1, 1]} : vector<16x4xf32> to vector<16x1xf32>
    %17 = vector.extract_strided_slice %1 {offsets = [2, 0], sizes = [1, 64], strides = [1, 1]} : vector<4x64xf32> to vector<1x64xf32>
    %18 = vector.broadcast %16 : vector<16x1xf32> to vector<16x64xf32>
    %19 = vector.broadcast %17 : vector<1x64xf32> to vector<16x64xf32>
    %20 = arith.mulf %18, %19 : vector<16x64xf32>
    %21 = arith.addf %15, %20 : vector<16x64xf32>
    %22 = vector.extract_strided_slice %0 {offsets = [0, 3], sizes = [16, 1], strides = [1, 1]} : vector<16x4xf32> to vector<16x1xf32>
    %23 = vector.extract_strided_slice %1 {offsets = [3, 0], sizes = [1, 64], strides = [1, 1]} : vector<4x64xf32> to vector<1x64xf32>
    %24 = vector.broadcast %22 : vector<16x1xf32> to vector<16x64xf32>
    %25 = vector.broadcast %23 : vector<1x64xf32> to vector<16x64xf32>
    %26 = arith.mulf %24, %25 : vector<16x64xf32>
    %27 = arith.addf %21, %26 : vector<16x64xf32>
    %28 = math.sin %27 : vector<16x64xf32>
    %29 = arith.truncf %28 : vector<16x64xf32> to vector<16x64xbf16>
    %c0_5 = arith.constant 0 : index
    %c0_6 = arith.constant 0 : index
    %30 = vector.load %arg4[%c0_5, %c0_6] : memref<64x512xbf16, #tpu.memory_space<vmem>>, vector<64x512xbf16>
    %cst = arith.constant dense<0.000000e+00> : vector<16x512xf32>
    %31 = tpu.matmul %29, %30, %cst {dimension_numbers = #tpu.dot_dimension_numbers<[1], [0], [0], [1], [0, 0, 1, 1], [], []>} : vector<16x64xbf16>, vector<64x512xbf16>, vector<16x512xf32> -> vector<16x512xf32>
    %c0_7 = arith.constant 0 : index
    %c0_8 = arith.constant 0 : index
    %32 = vector.load %arg5[%c0_7, %c0_8] : memref<1x512xf32, #tpu.memory_space<vmem>>, vector<1x512xf32>
    %33 = vector.broadcast %32 : vector<1x512xf32> to vector<16x512xf32>
    %34 = arith.addf %31, %33 : vector<16x512xf32>
    %35 = arith.negf %34 : vector<16x512xf32>
    %36 = math.exp %35 : vector<16x512xf32>
    %cst_9 = arith.constant 1.000000e+00 : f32
    %37 = vector.broadcast %cst_9 : f32 to vector<16x512xf32>
    %38 = arith.addf %37, %36 : vector<16x512xf32>
    %39 = arith.divf %37, %38 : vector<16x512xf32>
    %40 = arith.mulf %34, %39 : vector<16x512xf32>
    %41 = arith.truncf %40 : vector<16x512xf32> to vector<16x512xbf16>
    %c0_10 = arith.constant 0 : index
    %c0_11 = arith.constant 0 : index
    %42 = vector.load %arg6[%c0_10, %c0_11] : memref<512x512xbf16, #tpu.memory_space<vmem>>, vector<512x512xbf16>
    %cst_12 = arith.constant dense<0.000000e+00> : vector<16x512xf32>
    %43 = tpu.matmul %41, %42, %cst_12 {dimension_numbers = #tpu.dot_dimension_numbers<[1], [0], [0], [1], [0, 0, 1, 1], [], []>} : vector<16x512xbf16>, vector<512x512xbf16>, vector<16x512xf32> -> vector<16x512xf32>
    %c0_13 = arith.constant 0 : index
    %c0_14 = arith.constant 0 : index
    %44 = vector.load %arg7[%c0_13, %c0_14] : memref<1x512xf32, #tpu.memory_space<vmem>>, vector<1x512xf32>
    %45 = vector.broadcast %44 : vector<1x512xf32> to vector<16x512xf32>
    %46 = arith.addf %43, %45 : vector<16x512xf32>
    %47 = arith.negf %46 : vector<16x512xf32>
    %48 = math.exp %47 : vector<16x512xf32>
    %cst_15 = arith.constant 1.000000e+00 : f32
    %49 = vector.broadcast %cst_15 : f32 to vector<16x512xf32>
    %50 = arith.addf %49, %48 : vector<16x512xf32>
    %51 = arith.divf %49, %50 : vector<16x512xf32>
    %52 = arith.mulf %46, %51 : vector<16x512xf32>
    %53 = arith.truncf %52 : vector<16x512xf32> to vector<16x512xbf16>
    %c0_16 = arith.constant 0 : index
    %c0_17 = arith.constant 0 : index
    %54 = vector.load %arg8[%c0_16, %c0_17] : memref<512x128xbf16, #tpu.memory_space<vmem>>, vector<512x128xbf16>
    %cst_18 = arith.constant dense<0.000000e+00> : vector<16x128xf32>
    %55 = tpu.matmul %53, %54, %cst_18 {dimension_numbers = #tpu.dot_dimension_numbers<[1], [0], [0], [1], [0, 0, 1, 1], [], []>} : vector<16x512xbf16>, vector<512x128xbf16>, vector<16x128xf32> -> vector<16x128xf32>
    %c0_19 = arith.constant 0 : index
    %c0_20 = arith.constant 0 : index
    %56 = vector.load %arg9[%c0_19, %c0_20] : memref<1x128xf32, #tpu.memory_space<vmem>>, vector<1x128xf32>
    %57 = vector.broadcast %56 : vector<1x128xf32> to vector<16x128xf32>
    %58 = arith.addf %55, %57 : vector<16x128xf32>
    %c0_21 = arith.constant 0 : index
    %c0_22 = arith.constant 0 : index
    %59 = vector.load %arg10[%c0_21, %c0_22] : memref<16x128xf32, #tpu.memory_space<vmem>>, vector<16x128xf32>
    tpu.vector_store %arg10[%c0_21, %c0_22], %58 {strides = array<i32>} : memref<16x128xf32, #tpu.memory_space<vmem>>, vector<16x128xf32>,
    return
  }
  func.func @transform_0(%arg0: i32) -> (i32, i32) {
    %c0_i32 = arith.constant 0 : i32
    %c0_i32_0 = arith.constant 0 : i32
    return %arg0, %c0_i32 : i32, i32
  }
  func.func @transform_1(%arg0: i32) -> (i32, i32) {
    %c0_i32 = arith.constant 0 : i32
    %c0_i32_0 = arith.constant 0 : i32
    %c0_i32_1 = arith.constant 0 : i32
    return %c0_i32, %c0_i32_0 : i32, i32
  }
  func.func @transform_2(%arg0: i32) -> (i32, i32) {
    %c0_i32 = arith.constant 0 : i32
    %c0_i32_0 = arith.constant 0 : i32
    %c0_i32_1 = arith.constant 0 : i32
    return %c0_i32, %c0_i32_0 : i32, i32
  }
  func.func @transform_3(%arg0: i32) -> (i32, i32) {
    %c0_i32 = arith.constant 0 : i32
    %c0_i32_0 = arith.constant 0 : i32
    %c0_i32_1 = arith.constant 0 : i32
    return %c0_i32, %c0_i32_0 : i32, i32
  }
  func.func @transform_4(%arg0: i32) -> (i32, i32) {
    %c0_i32 = arith.constant 0 : i32
    %c0_i32_0 = arith.constant 0 : i32
    %c0_i32_1 = arith.constant 0 : i32
    return %c0_i32, %c0_i32_0 : i32, i32
  }
  func.func @transform_5(%arg0: i32) -> (i32, i32) {
    %c0_i32 = arith.constant 0 : i32
    %c0_i32_0 = arith.constant 0 : i32
    %c0_i32_1 = arith.constant 0 : i32
    return %c0_i32, %c0_i32_0 : i32, i32
  }
  func.func @transform_6(%arg0: i32) -> (i32, i32) {
    %c0_i32 = arith.constant 0 : i32
    %c0_i32_0 = arith.constant 0 : i32
    %c0_i32_1 = arith.constant 0 : i32
    return %c0_i32, %c0_i32_0 : i32, i32
  }
  func.func @transform_7(%arg0: i32) -> (i32, i32) {
    %c0_i32 = arith.constant 0 : i32
    %c0_i32_0 = arith.constant 0 : i32
    %c0_i32_1 = arith.constant 0 : i32
    return %c0_i32, %c0_i32_0 : i32, i32
  }
  func.func @transform_8(%arg0: i32) -> (i32, i32) {
    %c0_i32 = arith.constant 0 : i32
    %c0_i32_0 = arith.constant 0 : i32
    %c0_i32_1 = arith.constant 0 : i32
    return %c0_i32, %c0_i32_0 : i32, i32
  }
  func.func @transform_9(%arg0: i32) -> (i32, i32) {
    %c0_i32 = arith.constant 0 : i32
    %c0_i32_0 = arith.constant 0 : i32
    return %arg0, %c0_i32 : i32, i32
  }
}

</mosaic_0001>

<bundles_post_ra>
// kernel: tpu_custom_call.1
= control target key start
LH: loop header
LB: loop body
LE: loop exit
PB: predicated region body
PF: predicated region fallthrough
CT: control target
= control target key end

     0   :  { %14 = vsyncpa [#allocation3], 0  ;;  %s2975_s0 = inlined_call_operand.vmem [shape: f32[16,4], index: 0, kind: input, shape index: {}]   ;;  %s2976_s1 = inlined_call_operand.vmem [shape: f32[4,64], index: 1, kind: input, shape index: {}]   ;;  %s2977_s2 = inlined_call_operand.vmem [shape: f32[1,64], index: 2, kind: input, shape index: {}]   ;;  %s2978_s3 = inlined_call_operand.hbm [shape: bf16[64,512], index: 3, kind: input, shape index: {}]   ;;  %s2979_s4 = inlined_call_operand.vmem [shape: f32[1,512], index: 4, kind: input, shape index: {}]   ;;  %s2980_s5 = inlined_call_operand.hbm [shape: bf16[512,512], index: 5, kind: input, shape index: {}]   ;;  %s2981_s6 = inlined_call_operand.vmem [shape: f32[1,512], index: 6, kind: input, shape index: {}]   ;;  %s2982_s7 = inlined_call_operand.hbm [shape: bf16[512,128], index: 7, kind: input, shape index: {}]   ;;  %s2983_s8 = inlined_call_operand.vmem [shape: f32[1,128], index: 8, kind: input, shape index: {}]   ;;  %s2984_s9 = inlined_call_operand.hbm [shape: f32[16,128], index: 9, kind: output, shape index: {}]  }
   0x1   :  { %15 = vsyncpa [#allocation6], 0 }
   0x2   :  { %16 = vsyncpa [#allocation4], 0  ;;  %s2727_s30 = smov [#allocation5]   ;;  %s2728_s11 = smov [#allocation2]  }
   0x3   :  { %s42_s10 = sshll.u32 %s2727_s30, 4  ;;  %s28_s12 = sshll.u32 %s2728_s11, 4  ;;  %s43_s10 = int_to_ptr.vmem [resolvable:$true] %s42_s10  ;;  %s2797_s12 = int_to_ptr.vmem [resolvable:$true] %s28_s12 }
   0x4   :  { %s2633_s15 = scalar_lea.hbm %s2980_s5, 16384 }
   0x5   :  { %p2634_p0 = scmp.ne.s32.totalorder %s2980_s5, %s2633_s15  ;;  %p2637_p1 = scmp.lt.u32.totalorder %s2633_s15, %s2980_s5 }
   0x7   :  { %p2639_p2 = pnand %p2637_p1, %p2634_p0 }
   0x9   :  { %2642 = shalt.err (!%p2639_p2)
}
   0xa   :  { %s2643_s20 = scalar_lea.vmem %s43_s10, 16384  ;;  %p2648_p4 = scmp.lt.s32.totalorder %s43_s10, %s43_s10 }
   0xb   :  { %p2644_p3 = scmp.ne.s32.totalorder %s43_s10, %s2643_s20  ;;  %p2649_p5 = scmp.lt.s32.totalorder %s2643_s20, %s2643_s20 }
   0xd   :  { %p2650_p6 = por %p2649_p5, %p2648_p4 }
   0xf   :  { %p2651_p7 = pnand %p2650_p6, %p2644_p3 }
  0x11   :  { %2654 = shalt.err (!%p2651_p7)
}
  0x12   :  { %s2729_s21 = smov 256   ;;  %s2730_s22 = smov 16  }
  0x13   :  { %48 = dma.hbm_to_vmem [thread:$0]  %s2980_s5, 16384, %s43_s10, [#allocation6], %s2729_s21, %s2729_s21, %s2730_s22  }
  0x14   :  { %s2655_s27 = scalar_lea.hbm %s2978_s3, 2048 }
  0x15   :  { %p2656_p8 = scmp.ne.s32.totalorder %s2978_s3, %s2655_s27  ;;  %p2659_p9 = scmp.lt.u32.totalorder %s2655_s27, %s2978_s3 }
  0x17   :  { %p2661_p10 = pnand %p2659_p9, %p2656_p8 }
  0x19   :  { %2664 = shalt.err (!%p2661_p10)
}
  0x1a   :  { %s2665_s13 = scalar_lea.vmem %s2797_s12, 2048  ;;  %p2670_p12 = scmp.lt.s32.totalorder %s2797_s12, %s2797_s12 }
  0x1b   :  { %p2666_p11 = scmp.ne.s32.totalorder %s2797_s12, %s2665_s13  ;;  %p2671_p13 = scmp.lt.s32.totalorder %s2665_s13, %s2665_s13 }
  0x1d   :  { %p2672_p0 = por %p2671_p13, %p2670_p12 }
  0x1f   :  { %p2673_p1 = pnand %p2672_p0, %p2666_p11 }
  0x21   :  { %2676 = shalt.err (!%p2673_p1)
}
  0x22   :  { %34 = dma.hbm_to_vmem [thread:$0]  %s2978_s3, 2048, %s2797_s12, [#allocation3], %s2729_s21, %s2729_s21, %s2730_s22  }
  0x23   :  { %s2731_s14 = smov [#allocation7]   ;;  %s2677_s18 = scalar_lea.hbm %s2982_s7, 4096 }
  0x24   :  { %s56_s15 = sshll.u32 %s2731_s14, 4  ;;  %p2678_p2 = scmp.ne.s32.totalorder %s2982_s7, %s2677_s18  ;;  %s57_s15 = int_to_ptr.vmem [resolvable:$true] %s56_s15 }
  0x25   :  { %p2681_p3 = scmp.lt.u32.totalorder %s2677_s18, %s2982_s7 }
  0x27   :  { %p2683_p4 = pnand %p2681_p3, %p2678_p2 }
  0x29   :  { %2686 = shalt.err (!%p2683_p4)
}
  0x2a   :  { %s2687_s25 = scalar_lea.vmem %s57_s15, 4096  ;;  %p2692_p6 = scmp.lt.s32.totalorder %s57_s15, %s57_s15 }
  0x2b   :  { %p2688_p5 = scmp.ne.s32.totalorder %s57_s15, %s2687_s25  ;;  %p2693_p7 = scmp.lt.s32.totalorder %s2687_s25, %s2687_s25 }
  0x2d   :  { %p2694_p8 = por %p2693_p7, %p2692_p6 }
  0x2f   :  { %p2695_p9 = pnand %p2694_p8, %p2688_p5 }
  0x31   :  { %2698 = shalt.err (!%p2695_p9)
}
  0x32   :  { %s2732_s3 = smov 64   ;;  %s2733_s12 = smov 4  }
  0x33   :  { %62 = dma.hbm_to_vmem [thread:$0]  %s2982_s7, 4096, %s57_s15, [#allocation6], %s2732_s3, %s2732_s3, %s2733_s12  }
  0x34   :  { %2721 = dma.done.wait [#allocation3], 2048  }
  0x35   :  { %2722 = vsyncadd [#allocation3], 4294965248 }
  0x36   :  { %2723 = dma.done.wait [#allocation6], 20480  }
  0x37   :  { %2724 = vsyncadd [#allocation6], 4294946816  ;;  %v2734_v0 = vmov 1   ;;  %v2735_v1 = vmov 0   ;;  %v75_v2 = vld [vmem:[%s2975_s0] sm:$0xff]  ;;  %v76_v3 = vld [vmem:[%s2975_s0 + $0x8] sm:$0xff]  ;;  %v89_v24 = vlaneseq }
  0x38   :  { %2308 = vset.pattern.permute.xlu1 %v2734_v0  ;;  %2307 = vset.pattern.permute.xlu0 %v2735_v1  ;;  %v2736_v4 = vmov 2   ;;  %v2737_v5 = vmov 3   ;;  %v2313_v6 = vld [vmem:[#allocation2 + $0x4] ss:$16 sps:$4 sm:$0xff]   ;;  %v2315_v7 = vld [vmem:[#allocation2 + $0xc] ss:$16 sps:$4 sm:$0xff]  }
  0x39   :  { %514 = vmatprep.mubr.bf16.mxu0 %v2735_v1  ;;  %557 = vmatprep.mubr.bf16.mxu1 %v2735_v1  ;;  %v2317_v8 = vld [vmem:[#allocation2] ss:$16 sps:$4 sm:$0xff]   ;;  %v2318_v9 = vld [vmem:[#allocation2 + $0x8] ss:$16 sps:$4 sm:$0xff]   ;;  %v2319_v10 = vld [vmem:[#allocation2 + $0x24] ss:$16 sps:$4 sm:$0xff]  }
  0x3a   :  { %104 = vperm.xlu1 %2308, %v75_v2   ;;  %81 = vperm.xlu0 %2307, %v75_v2   ;;  %v2321_v11 = vld [vmem:[#allocation2 + $0x2c] ss:$16 sps:$4 sm:$0xff]   ;;  %v2323_v12 = vld [vmem:[#allocation2 + $0x20] ss:$16 sps:$4 sm:$0xff]   ;;  %v2324_v13 = vld [vmem:[#allocation2 + $0x28] ss:$16 sps:$4 sm:$0xff]  }
  0x3b   :  { %482 = vmatprep.subr.bf16.mxu0 %v2313_v6  ;;  %525 = vmatprep.subr.bf16.mxu1 %v2315_v7  ;;  %v2325_v14 = vld [vmem:[#allocation2 + $0x44] ss:$16 sps:$4 sm:$0xff]   ;;  %v2327_v15 = vld [vmem:[#allocation2 + $0x4c] ss:$16 sps:$4 sm:$0xff]   ;;  %v2329_v16 = vld [vmem:[#allocation2 + $0x40] ss:$16 sps:$4 sm:$0xff]  }
  0x3c   :  { %483 = vmatpush1.bf16.msra.mxu0 %v2317_v8  ;;  %526 = vmatpush1.bf16.msra.mxu1 %v2318_v9  ;;  %v2330_v17 = vld [vmem:[#allocation2 + $0x48] ss:$16 sps:$4 sm:$0xff]   ;;  %v2331_v18 = vld [vmem:[#allocation2 + $0x64] ss:$16 sps:$4 sm:$0xff]   ;;  %v2333_v19 = vld [vmem:[#allocation2 + $0x6c] ss:$16 sps:$4 sm:$0xff]  }
  0x3d   :  { %484 = vmatprep.subr.bf16.mxu0 %v2319_v10  ;;  %527 = vmatprep.subr.bf16.mxu1 %v2321_v11  ;;  %v2335_v20 = vld [vmem:[#allocation2 + $0x60] ss:$16 sps:$4 sm:$0xff]   ;;  %v2336_v21 = vld [vmem:[#allocation2 + $0x68] ss:$16 sps:$4 sm:$0xff]   ;;  %v2339_v22 = vld [vmem:[#allocation5 + $0x4] ss:$16 sps:$4 sm:$0xff]  }
  0x3e   :  { %108 = vperm.xlu1 %2308, %v76_v3   ;;  %86 = vperm.xlu0 %2307, %v76_v3   ;;  %v2342_v23 = vld [vmem:[#allocation5 + $0xc] ss:$16 sps:$4 sm:$0xff]   ;;  %v90_v25 = vshrl.u32 %v89_v24, 7  ;;  %v77_v27 = vld [vmem:[%s2976_s1] sm:$0xf]  ;;  %s2744_s10 = smov [#allocation8]  }
  0x3f   :  { %v2015_v37 = vld [vmem:[%s2977_s2] ss:$0 sm:$0xff]  ;;  %v2741_v24 = vmov 2102212464   ;;  %s2002_s14 = sshll.u32 %s2744_s10, 4  ;;  %s2003_s14 = int_to_ptr.vmem [resolvable:$true] %s2002_s14 }
  0x40   :  { %485 = vmatpush1.bf16.msra.mxu0 %v2323_v12  ;;  %528 = vmatpush1.bf16.msra.mxu1 %v2324_v13  ;;  %v2846_v26 = vsub.s32 0, %v90_v25  ;;  %v2852_v31 = vsub.s32 1, %v90_v25  ;;  %v2854_v32 = vsub.s32 2, %v90_v25  ;;  %v2859_v38 = vsub.s32 3, %v90_v25  ;;  %p2704_p11 = scmp.lt.s32.totalorder %s2003_s14, %s2003_s14 }
  0x41   :  { %486 = vmatprep.subr.bf16.mxu0 %v2325_v14  ;;  %529 = vmatprep.subr.bf16.mxu1 %v2327_v15 }
  0x42   :  { %2310 = vset.pattern.permute.xlu1 %v2736_v4  ;;  %2309 = vset.pattern.permute.xlu0 %v2736_v4  ;;  %v92_v30 = vrot.slane %v77_v27, %v2846_v26  ;;  %v114_v39 = vrot.slane %v77_v27, %v2852_v31  ;;  %v130_v41 = vrot.slane %v77_v27, %v2854_v32 }
  0x43   :  { %124 = vperm.xlu1 %2310, %v76_v3   ;;  %120 = vperm.xlu0 %2309, %v75_v2   ;;  %v146_v46 = vrot.slane %v77_v27, %v2859_v38  ;;  %v2742_v27 = vmov 920167782  }
  0x44   :  { %487 = vmatpush1.bf16.msra.mxu0 %v2329_v16  ;;  %530 = vmatpush1.bf16.msra.mxu1 %v2330_v17  ;;  %v2738_v16 = vmov 683565275  }
  0x45   :  { %488 = vmatprep.subr.bf16.mxu0 %v2331_v18  ;;  %531 = vmatprep.subr.bf16.mxu1 %v2333_v19 }
  0x47   :  { %2311 = vset.pattern.permute.xlu1 %v2737_v5  ;;  %2312 = vset.pattern.permute.xlu0 %v2737_v5 }
  0x48   :  { %136 = vperm.xlu1 %2311, %v75_v2   ;;  %140 = vperm.xlu0 %2312, %v76_v3  }
  0x49   :  { %489 = vmatpush1.bf16.msra.mxu0 %v2335_v20  ;;  %532 = vmatpush1.bf16.msra.mxu1 %v2336_v21  ;;  %v2739_v20 = vmov 2475754826  }
  0x4a   :  { %1418 = vmatprep.subr.bf16.mxu0 %v2339_v22  ;;  %1504 = vmatprep.subr.bf16.mxu1 %v2342_v23  ;;  %v2740_v22 = vmov 2131351028  }
  0xb9   :  { %v105_v28 = vpop.permute.xlu1 %104  ;;  %v82_v29 = vpop.permute.xlu0 %81 }
  0xba   :  { %v93_v35 = vmul.f32 %v92_v30, %v82_v29  ;;  %v115_v47 = vmul.f32 %v114_v39, %v105_v28 }
  0xbc   :  { %v101_v42 = vadd.f32 %v2015_v37, %v93_v35 }
  0xbd   :  { %v109_v33 = vpop.permute.xlu1 %108  ;;  %v87_v34 = vpop.permute.xlu0 %86 }
  0xbe   :  { %v94_v36 = vmul.f32 %v92_v30, %v87_v34  ;;  %v116_v43 = vmul.f32 %v114_v39, %v109_v33  ;;  %v117_v51 = vadd.f32 %v115_v47, %v101_v42 }
  0xc0   :  { %v102_v40 = vadd.f32 %v2015_v37, %v94_v36  ;;  %v2743_v36 = vmov 1326507024  }
  0xc2   :  { %v125_v44 = vpop.permute.xlu1 %124  ;;  %v121_v45 = vpop.permute.xlu0 %120  ;;  %v118_v48 = vadd.f32 %v116_v43, %v102_v40 }
  0xc3   :  { %v132_v49 = vmul.f32 %v130_v41, %v125_v44  ;;  %v131_v50 = vmul.f32 %v130_v41, %v121_v45 }
  0xc5   :  { %v134_v54 = vadd.f32 %v132_v49, %v118_v48  ;;  %v133_v55 = vadd.f32 %v131_v50, %v117_v51 }
  0xc7   :  { %v137_v52 = vpop.permute.xlu1 %136  ;;  %v141_v53 = vpop.permute.xlu0 %140 }
  0xc8   :  { %v147_v56 = vmul.f32 %v146_v46, %v137_v52  ;;  %v148_v57 = vmul.f32 %v146_v46, %v141_v53 }
  0xca   :  { %v2864_v58 = vadd.f32 %v147_v56, %v133_v55  ;;  %v2866_v59 = vadd.f32 %v148_v57, %v134_v54 }
  0xcc   :  { %v151_v60 = vand.u32 2147483647, %v2864_v58  ;;  %v154_v61 = vand.u32 2139095040, %v2864_v58  ;;  %v258_v62 = vand.u32 2139095040, %v2866_v59  ;;  %v255_v1 = vand.u32 2147483647, %v2866_v59 }
  0xcd   :  { %vm153_vm14 = vcmp.lt.s32.totalorder %v2864_v58, 0 }
  0xce   :  { %v155_v63 = vshrl.u32 %v154_v61, 23  ;;  %v158_v0 = vand.u32 8388607, %v151_v60  ;;  %v259_v2 = vshrl.u32 %v258_v62, 23  ;;  %v2876_v7 = vand.u32 8388607, %v255_v1 }
  0xcf   :  { %vm2919_vm15 = vcmp.le.f32.partialorder %v151_v60, 0.7853982 }
  0xd0   :  { %v2016_v3 = vadd.s32 4294967169, %v155_v63  ;;  %v2020_v4 = vadd.s32 4294967169, %v259_v2  ;;  %v159_v6 = vor.u32 8388608, %v158_v0  ;;  %v263_v14 = vor.u32 8388608, %v2876_v7 }
  0xd2   :  { %v161_v5 = vadd.s32 1, %v2016_v3  ;;  %v265_v8 = vadd.s32 1, %v2020_v4  ;;  %v2878_v13 = vshll.u32 %v159_v6, 8 }
  0xd4   :  { %vm162_vm0 = vcmp.gt.s32.totalorder %v161_v5, 0  ;;  %vm266_vm1 = vcmp.gt.s32.totalorder %v265_v8, 0 }
  0xd5   :  { %v163_v9 = vsel %vm162_vm0, %v161_v5, 0  ;;  %v267_v12 = vsel %vm266_vm1, %v265_v8, 0  ;;  %vm257_vm0 = vcmp.lt.s32.totalorder %v2866_v59, 0  ;;  %vm256_vm1 = vcmp.le.f32.partialorder %v255_v1, 0.7853982 }
  0xd6   :  { %v164_v10 = vshrl.u32 %v163_v9, 5  ;;  %v165_v11 = vand.u32 31, %v163_v9  ;;  %v2881_v18 = vshrl.u32 %v267_v12, 5  ;;  %v269_v19 = vand.u32 31, %v267_v12 }
  0xd8   :  { %v166_v15 = vsub.s32 32, %v165_v11  ;;  %v168_v17 = vshll.u32 %v2738_v16, %v165_v11  ;;  %v171_v21 = vshll.u32 %v2739_v20, %v165_v11  ;;  %v174_v23 = vshll.u32 %v2740_v22, %v165_v11 }
  0xd9   :  { %v177_v25 = vshll.u32 %v2741_v24, %v165_v11  ;;  %v180_v28 = vshll.u32 %v2742_v27, %v165_v11  ;;  %vm183_vm2 = vcmp.lt.s32.totalorder %v164_v10, 1  ;;  %vm184_vm3 = vcmp.lt.s32.totalorder %v164_v10, 2 }
  0xda   :  { %v169_v29 = vshrl.u32 %v2739_v20, %v166_v15  ;;  %v172_v30 = vshrl.u32 %v2740_v22, %v166_v15  ;;  %v175_v33 = vshrl.u32 %v2741_v24, %v166_v15  ;;  %v167_v34 = vshrl.u32 %v2738_v16, %v166_v15 }
  0xdb   :  { %v178_v35 = vshrl.u32 %v2742_v27, %v166_v15  ;;  %v181_v37 = vshrl.u32 %v2743_v36, %v166_v15  ;;  %v270_v42 = vsub.s32 32, %v269_v19  ;;  %vm185_vm4 = vcmp.lt.s32.totalorder %v164_v10, 3 }
  0xdc   :  { %v170_v39 = vor.u32 %v169_v29, %v168_v17  ;;  %v173_v40 = vor.u32 %v172_v30, %v171_v21  ;;  %v176_v41 = vor.u32 %v175_v33, %v174_v23  ;;  %vm186_vm5 = vcmp.lt.s32.totalorder %v164_v10, 4 }
  0xdd   :  { %v179_v43 = vor.u32 %v178_v35, %v177_v25  ;;  %v182_v44 = vor.u32 %v181_v37, %v180_v28  ;;  %v272_v52 = vshll.u32 %v2738_v16, %v269_v19  ;;  %v273_v55 = vshrl.u32 %v2739_v20, %v270_v42 }
  0xde   :  { %v187_v45 = vsel %vm183_vm2, %v167_v34, %v170_v39  ;;  %v188_v46 = vsel %vm186_vm5, %v176_v41, 2102212464  ;;  %v191_v47 = vsel %vm183_vm2, %v170_v39, %v173_v40  ;;  %v195_v48 = vsel %vm183_vm2, %v173_v40, %v176_v41 }
  0xdf   :  { %v189_v49 = vsel %vm185_vm4, %v173_v40, %v188_v46  ;;  %v192_v50 = vsel %vm186_vm5, %v179_v43, 920167782  ;;  %v196_v51 = vsel %vm186_vm5, %v182_v44, 1326507024  ;;  %v275_v56 = vshll.u32 %v2739_v20, %v269_v19 }
  0xe0   :  { %v193_v53 = vsel %vm185_vm4, %v176_v41, %v192_v50  ;;  %v197_v54 = vsel %vm185_vm4, %v179_v43, %v196_v51  ;;  %v190_v57 = vsel %vm184_vm3, %v187_v45, %v189_v49  ;;  %v276_v63 = vshrl.u32 %v2740_v22, %v270_v42 }
  0xe1   :  { %v194_v61 = vsel %vm184_vm3, %v191_v47, %v193_v53  ;;  %v198_v62 = vsel %vm184_vm3, %v195_v48, %v197_v54  ;;  %v274_v5 = vor.u32 %v273_v55, %v272_v52  ;;  %v278_v7 = vshll.u32 %v2740_v22, %v269_v19 }
  0xe2   :  { %v2890_v0 = vmul.u32.u64.low %v2878_v13, %v198_v62  ;;  %v2891_v2 = vmul.u32.u64.high %v2878_v13, %v198_v62, %v2890_v0  ;;  %v2894_v3 = vmul.u32.u64.low %v2878_v13, %v194_v61  ;;  %v2895_v4 = vmul.u32.u64.high %v2878_v13, %v194_v61, %v2894_v3 }
  0xe3   :  { %v277_v6 = vor.u32 %v276_v63, %v275_v56  ;;  %v279_v8 = vshrl.u32 %v2741_v24, %v270_v42  ;;  %v281_v9 = vshll.u32 %v2741_v24, %v269_v19  ;;  %v282_v11 = vshrl.u32 %v2742_v27, %v270_v42 }
  0xe4   :  { %v285_v12 = vshrl.u32 %v2743_v36, %v270_v42  ;;  %v303_v15 = vshll.u32 %v263_v14, 8  ;;  %v206_v10 = vmul.u32 %v2878_v13, %v190_v57  ;;  %v271_v17 = vshrl.u32 %v2738_v16, %v270_v42 }
  0xe5   :  { %v280_v20 = vor.u32 %v279_v8, %v278_v7  ;;  %v284_v21 = vshll.u32 %v2742_v27, %v269_v19  ;;  %vm208_vm6 = vc.u32 %v2891_v2, %v2894_v3  ;;  %v209_v23 = vadd.s32 1, %v2895_v4 }
  0xe6   :  { %v283_v25 = vor.u32 %v282_v11, %v281_v9  ;;  %vm287_vm7 = vcmp.lt.s32.totalorder %v2881_v18, 1  ;;  %vm289_vm8 = vcmp.lt.s32.totalorder %v2881_v18, 3  ;;  %vm290_vm9 = vcmp.lt.s32.totalorder %v2881_v18, 4 }
  0xe7   :  { %v286_v28 = vor.u32 %v285_v12, %v284_v21  ;;  %v295_v22 = vsel %vm287_vm7, %v274_v5, %v277_v6  ;;  %v210_v14 = vsel %vm208_vm6, %v209_v23, %v2895_v4  ;;  %v292_v24 = vsel %vm290_vm9, %v280_v20, 2102212464 }
  0xe8   :  { %v296_v13 = vsel %vm290_vm9, %v283_v25, 920167782  ;;  %v299_v16 = vsel %vm287_vm7, %v277_v6, %v280_v20  ;;  %v211_v29 = vadd.s32 %v210_v14, %v206_v10  ;;  %vm288_vm10 = vcmp.lt.s32.totalorder %v2881_v18, 2 }
  0xe9   :  { %v297_v19 = vsel %vm289_vm8, %v280_v20, %v296_v13  ;;  %v300_v27 = vsel %vm290_vm9, %v286_v28, 1326507024  ;;  %v291_v30 = vsel %vm287_vm7, %v271_v17, %v274_v5  ;;  %v293_v33 = vsel %vm289_vm8, %v277_v6, %v292_v24 }
  0xea   :  { %v298_v34 = vsel %vm288_vm10, %v295_v22, %v297_v19  ;;  %v301_v35 = vsel %vm289_vm8, %v283_v25, %v300_v27  ;;  %v212_v36 = vadd.s32 536870912, %v211_v29  ;;  %v294_v44 = vsel %vm288_vm10, %v291_v30, %v293_v33 }
  0xeb   :  { %v302_v37 = vsel %vm288_vm10, %v299_v16, %v301_v35  ;;  %v2905_v39 = vmul.u32.u64.low %v303_v15, %v298_v34  ;;  %v2906_v40 = vmul.u32.u64.high %v303_v15, %v298_v34, %v2905_v39  ;;  %v310_v18 = vmul.u32 %v303_v15, %v294_v44 }
  0xec   :  { %v2908_v41 = vmul.u32.u64.low %v303_v15, %v302_v37  ;;  %v2909_v42 = vmul.u32.u64.high %v303_v15, %v302_v37, %v2908_v41  ;;  %v213_v43 = vshrl.u32 %v212_v36, 30  ;;  %v207_v63 = vadd.s32 %v2894_v3, %v2891_v2 }
  0xed   :  { %v313_v46 = vadd.s32 1, %v2906_v40  ;;  %vm243_vm6 = vweird.f32 %v2864_v58  ;;  %vm347_vm9 = vweird.f32 %v2866_v59  ;;  %vm478_vm10 = vcmask 523264  }
  0xee   :  { %v214_v45 = vshll.u32 %v213_v43, 30  ;;  %vm312_vm11 = vc.u32 %v2909_v42, %v2905_v39  ;;  %v311_v23 = vadd.s32 %v2905_v39, %v2909_v42  ;;  %v237_v27 = vsub.s32 4, %v213_v43 }
  0xef   :  { %v314_v48 = vsel %vm312_vm11, %v313_v46, %v2906_v40 }
  0xf0   :  { %v215_v47 = vsub.s32 %v211_v29, %v214_v45  ;;  %v315_v49 = vadd.s32 %v314_v48, %v310_v18  ;;  %v238_v36 = vsel %vm153_vm14, %v237_v27, %v213_v43  ;;  %v2378_v29 = vld [vmem:[#allocation5 + $0xcc] ss:$16 sps:$4 sm:$0xff]   ;;  %v2376_v27 = vld [vmem:[#allocation5 + $0xc8] ss:$16 sps:$4 sm:$0xff]  }
  0xf1   :  { %v240_v60 = vsel %vm2919_vm15, 0, %v238_v36  ;;  %v2387_v36 = vld [vmem:[#allocation5 + $0x104] ss:$16 sps:$4 sm:$0xff]  }
  0xf2   :  { %v217_v50 = vsub.s32 0, %v215_v47  ;;  %v316_v51 = vadd.s32 536870912, %v315_v49  ;;  %v244_v45 = vadd.s32 3, %v240_v60  ;;  %v2393_v60 = vld [vmem:[#allocation5 + $0x124] ss:$16 sps:$4 sm:$0xff]  }
  0xf4   :  { %v2017_v52 = vmin.u32 %v217_v50, %v215_v47  ;;  %v317_v53 = vshrl.u32 %v316_v51, 30 }
  0xf6   :  { %v219_v54 = vclz %v2017_v52  ;;  %v318_v55 = vshll.u32 %v317_v53, 30  ;;  %v341_v39 = vsub.s32 4, %v317_v53 }
  0xf8   :  { %v2018_v56 = vadd.s32 4294967294, %v219_v54  ;;  %v319_v57 = vsub.s32 %v315_v49, %v318_v55  ;;  %v342_v42 = vsel %vm257_vm0, %v341_v39, %v317_v53  ;;  %v2385_v39 = vld [vmem:[#allocation5 + $0x100] ss:$16 sps:$4 sm:$0xff]  }
  0xf9   :  { %v344_v43 = vsel %vm256_vm1, 0, %v342_v42  ;;  %v2391_v42 = vld [vmem:[#allocation5 + $0x120] ss:$16 sps:$4 sm:$0xff]  }
  0xfa   :  { %vm2019_vm12 = vcmp.lt.s32.totalorder %v2018_v56, 0  ;;  %v321_v62 = vsub.s32 0, %v319_v57  ;;  %v348_v50 = vadd.s32 3, %v344_v43  ;;  %v2397_v43 = vld [vmem:[#allocation5 + $0x140] ss:$16 sps:$4 sm:$0xff]  }
  0xfb   :  { %v222_v61 = vsel %vm2019_vm12, 0, %v2018_v56 }
  0xfc   :  { %v223_v0 = vsub.s32 32, %v222_v61  ;;  %v227_v4 = vsub.s32 4294967266, %v222_v61  ;;  %v2021_v5 = vmin.u32 %v321_v62, %v319_v57  ;;  %v224_v6 = vshll.u32 %v215_v47, %v222_v61 }
  0xfd   :  { %v245_v47 = vand.u32 3, %v244_v45  ;;  %v349_v54 = vand.u32 3, %v348_v50  ;;  %v2399_v45 = vld [vmem:[#allocation5 + $0x144] ss:$16 sps:$4 sm:$0xff]   ;;  %v2406_v50 = vld [vmem:[#allocation5 + $0x168] ss:$16 sps:$4 sm:$0xff]  }
  0xfe   :  { %v225_v7 = vshrl.u32 %v207_v63, %v223_v0  ;;  %v228_v8 = vadd.s32 127, %v227_v4  ;;  %v323_v9 = vclz %v2021_v5  ;;  %v2337_v5 = vld [vmem:[#allocation5] ss:$16 sps:$4 sm:$0xff]  }
  0xff   :  { %vm247_vm2 = vcmp.eq.s32.totalorder %v245_v47, 0  ;;  %vm250_vm3 = vcmp.eq.s32.totalorder %v245_v47, 2  ;;  %vm246_vm4 = vcmp.lt.s32.totalorder %v245_v47, 2  ;;  %vm354_vm5 = vcmp.eq.s32.totalorder %v349_v54, 2  ;;  %v2405_v47 = vld [vmem:[#allocation5 + $0x164] ss:$16 sps:$4 sm:$0xff]  }
 0x100   :  { %v226_v11 = vor.u32 %v225_v7, %v224_v6  ;;  %v229_v12 = vshll.u32 %v228_v8, 23  ;;  %v2022_v15 = vadd.s32 4294967294, %v323_v9  ;;  %vm351_vm7 = vcmp.eq.s32.totalorder %v349_v54, 0  ;;  %v2340_v6 = vld [vmem:[#allocation5 + $0x8] ss:$16 sps:$4 sm:$0xff]  }
 0x101   :  { %vm350_vm8 = vcmp.lt.s32.totalorder %v349_v54, 2  ;;  %v2345_v8 = vld [vmem:[#allocation5 + $0x24] ss:$16 sps:$4 sm:$0xff]   ;;  %v2348_v9 = vld [vmem:[#allocation5 + $0x2c] ss:$16 sps:$4 sm:$0xff]  }
 0x102   :  { %v230_v10 = vor.u32 4788187, %v229_v12  ;;  %vm2023_vm13 = vcmp.lt.s32.totalorder %v2022_v15, 0  ;;  %v233_v20 = vcvt.s32.f32 %v226_v11  ;;  %v2346_v11 = vld [vmem:[#allocation5 + $0x28] ss:$16 sps:$4 sm:$0xff]  }
 0x103   :  { %v326_v21 = vsel %vm2023_vm13, 0, %v2022_v15  ;;  %v2351_v12 = vld [vmem:[#allocation5 + $0x44] ss:$16 sps:$4 sm:$0xff]   ;;  %v2354_v15 = vld [vmem:[#allocation5 + $0x4c] ss:$16 sps:$4 sm:$0xff]  }
 0x104   :  { %v231_v17 = vand.u32 2147483647, %v230_v10  ;;  %v327_v25 = vsub.s32 32, %v326_v21  ;;  %v331_v28 = vsub.s32 4294967266, %v326_v21  ;;  %v328_v3 = vshll.u32 %v319_v57, %v326_v21  ;;  %v2352_v10 = vld [vmem:[#allocation5 + $0x48] ss:$16 sps:$4 sm:$0xff]  }
 0x105   :  { %v2355_v21 = vld [vmem:[#allocation5 + $0x60] ss:$16 sps:$4 sm:$0xff]  }
 0x106   :  { %v234_v2 = vmul.f32 %v233_v20, %v231_v17  ;;  %v329_v22 = vshrl.u32 %v311_v23, %v327_v25  ;;  %v332_v14 = vadd.s32 127, %v331_v28  ;;  %v2357_v17 = vld [vmem:[#allocation5 + $0x64] ss:$16 sps:$4 sm:$0xff]   ;;  %v2360_v20 = vld [vmem:[#allocation5 + $0x6c] ss:$16 sps:$4 sm:$0xff]  }
 0x107   :  { %v2358_v23 = vld [vmem:[#allocation5 + $0x68] ss:$16 sps:$4 sm:$0xff]   ;;  %v2363_v25 = vld [vmem:[#allocation5 + $0x84] ss:$16 sps:$4 sm:$0xff]   ;;  %v2366_v28 = vld [vmem:[#allocation5 + $0x8c] ss:$16 sps:$4 sm:$0xff]  }
 0x108   :  { %v235_v24 = vxor.u32 2147483648, %v234_v2  ;;  %v330_v13 = vor.u32 %v329_v22, %v328_v3  ;;  %v333_v16 = vshll.u32 %v332_v14, 23  ;;  %v2364_v3 = vld [vmem:[#allocation5 + $0x88] ss:$16 sps:$4 sm:$0xff]   ;;  %v2369_v22 = vld [vmem:[#allocation5 + $0xa4] ss:$16 sps:$4 sm:$0xff]  }
 0x109   :  { %v2372_v14 = vld [vmem:[#allocation5 + $0xac] ss:$16 sps:$4 sm:$0xff]   ;;  %v2409_v54 = vld [vmem:[#allocation5 + $0x180] ss:$16 sps:$4 sm:$0xff]  }
 0x10a   :  { %v236_v19 = vsel %vm153_vm14, %v235_v24, %v234_v2  ;;  %v334_v33 = vor.u32 4788187, %v333_v16  ;;  %v337_v35 = vcvt.s32.f32 %v330_v13  ;;  %v2361_v2 = vld [vmem:[#allocation5 + $0x80] ss:$16 sps:$4 sm:$0xff]   ;;  %v2370_v13 = vld [vmem:[#allocation5 + $0xa8] ss:$16 sps:$4 sm:$0xff]  }
 0x10b   :  { %v239_v30 = vsel %vm2919_vm15, %v2864_v58, %v236_v19  ;;  %v2343_v58 = vld [vmem:[#allocation5 + $0x20] ss:$16 sps:$4 sm:$0xff]   ;;  %v2375_v16 = vld [vmem:[#allocation5 + $0xc4] ss:$16 sps:$4 sm:$0xff]  }
 0x10c   :  { %2561 = vcosq.f32 %v239_v30  ;;  %v335_v34 = vand.u32 2147483647, %v334_v33  ;;  %v2367_v24 = vld [vmem:[#allocation5 + $0xa0] ss:$16 sps:$4 sm:$0xff]   ;;  %v2384_v33 = vld [vmem:[#allocation5 + $0xec] ss:$16 sps:$4 sm:$0xff]  }
 0x10d   :  { %2563 = vsinq.f32 %v239_v30  ;;  %v2373_v19 = vld [vmem:[#allocation5 + $0xc0] ss:$16 sps:$4 sm:$0xff]   ;;  %v2381_v30 = vld [vmem:[#allocation5 + $0xe4] ss:$16 sps:$4 sm:$0xff]  }
 0x10e   :  { %v338_v37 = vmul.f32 %v337_v35, %v335_v34  ;;  %v2379_v34 = vld [vmem:[#allocation5 + $0xe0] ss:$16 sps:$4 sm:$0xff]   ;;  %v2382_v35 = vld [vmem:[#allocation5 + $0xe8] ss:$16 sps:$4 sm:$0xff]  }
 0x110   :  { %v339_v40 = vxor.u32 2147483648, %v338_v37 }
 0x112   :  { %v340_v41 = vsel %vm257_vm0, %v339_v40, %v338_v37  ;;  %v2390_v37 = vld [vmem:[#allocation5 + $0x10c] ss:$16 sps:$4 sm:$0xff]   ;;  %v2388_v40 = vld [vmem:[#allocation5 + $0x108] ss:$16 sps:$4 sm:$0xff]  }
 0x113   :  { %v343_v44 = vsel %vm256_vm1, %v2866_v59, %v340_v41  ;;  %v2349_v59 = vld [vmem:[#allocation5 + $0x40] ss:$16 sps:$4 sm:$0xff]   ;;  %v2396_v41 = vld [vmem:[#allocation5 + $0x12c] ss:$16 sps:$4 sm:$0xff]  }
 0x114   :  { %2565 = vcosq.f32 %v343_v44 }
 0x115   :  { %2567 = vsinq.f32 %v343_v44  ;;  %v2394_v44 = vld [vmem:[#allocation5 + $0x128] ss:$16 sps:$4 sm:$0xff]  }
 0x116   :  { %v2562_v46 = vpop.eup %2561 }
 0x117   :  { %v2564_v18 = vpop.eup %2563  ;;  %v251_v49 = vxor.u32 2147483648, %v2562_v46 }
 0x118   :  { %v248_v48 = vxor.u32 2147483648, %v2564_v18 }
 0x119   :  { %v252_v52 = vsel %vm250_vm3, %v251_v49, %v2564_v18  ;;  %v2400_v18 = vld [vmem:[#allocation5 + $0x148] ss:$16 sps:$4 sm:$0xff]   ;;  %v2403_v49 = vld [vmem:[#allocation5 + $0x160] ss:$16 sps:$4 sm:$0xff]  }
 0x11a   :  { %v249_v51 = vsel %vm247_vm2, %v2562_v46, %v248_v48  ;;  %v2402_v46 = vld [vmem:[#allocation5 + $0x14c] ss:$16 sps:$4 sm:$0xff]  }
 0x11b   :  { %v253_v55 = vsel %vm246_vm4, %v249_v51, %v252_v52  ;;  %v2408_v48 = vld [vmem:[#allocation5 + $0x16c] ss:$16 sps:$4 sm:$0xff]   ;;  %v2411_v51 = vld [vmem:[#allocation5 + $0x184] ss:$16 sps:$4 sm:$0xff]  }
 0x11c   :  { %v254_v62 = vsel %vm243_vm6, nan, %v253_v55  ;;  %v2414_v52 = vld [vmem:[#allocation5 + $0x18c] ss:$16 sps:$4 sm:$0xff]  }
 0x11d   :  { %v2420_v55 = vld [vmem:[#allocation5 + $0x1ac] ss:$16 sps:$4 sm:$0xff]  }
 0x11e   :  { %v2566_v1 = vpop.eup %2565 }
 0x11f   :  { %v2568_v53 = vpop.eup %2567  ;;  %v355_v56 = vxor.u32 2147483648, %v2566_v1 }
 0x120   :  { %v352_v57 = vxor.u32 2147483648, %v2568_v53 }
 0x121   :  { %v356_v61 = vsel %vm354_vm5, %v355_v56, %v2568_v53  ;;  %v2417_v53 = vld [vmem:[#allocation5 + $0x1a4] ss:$16 sps:$4 sm:$0xff]   ;;  %v2415_v56 = vld [vmem:[#allocation5 + $0x1a0] ss:$16 sps:$4 sm:$0xff]  }
 0x122   :  { %v353_v63 = vsel %vm351_vm7, %v2566_v1, %v352_v57  ;;  %v2412_v1 = vld [vmem:[#allocation5 + $0x188] ss:$16 sps:$4 sm:$0xff]  }
 0x123   :  { %v357_v0 = vsel %vm350_vm8, %v353_v63, %v356_v61  ;;  %v2418_v57 = vld [vmem:[#allocation5 + $0x1a8] ss:$16 sps:$4 sm:$0xff]   ;;  %v2423_v61 = vld [vmem:[#allocation5 + $0x1c4] ss:$16 sps:$4 sm:$0xff]   ;;  %v2421_v63 = vld [vmem:[#allocation5 + $0x1c0] ss:$16 sps:$4 sm:$0xff]  }
 0x124   :  { %v358_v4 = vsel %vm347_vm9, nan, %v357_v0  ;;  %v2424_v0 = vld [vmem:[#allocation5 + $0x1c8] ss:$16 sps:$4 sm:$0xff]  }
 0x125   :  { %v359_v7 = vpack.c.bf16 %v358_v4, %v254_v62  ;;  %v2426_v62 = vld [vmem:[#allocation5 + $0x1cc] ss:$16 sps:$4 sm:$0xff]   ;;  %v2429_v4 = vld [vmem:[#allocation5 + $0x1e4] ss:$16 sps:$4 sm:$0xff]  }
 0x127   :  { %2040 = vmatmul.mubr.msk.bf16.vlgmr.msra.gmra.mrb[0].mxu0 %vm478_vm10, %v359_v7  ;;  %2041 = vmatmul.mubr.msk.bf16.vlgmr.msra.gmra.mrb[0].mxu1 %vm478_vm10, %v359_v7  ;;  %v2430_v7 = vld [vmem:[#allocation5 + $0x1e8] ss:$16 sps:$4 sm:$0xff]  }
 0x128   :  { %1419 = vmatpush1.bf16.msra.mxu0 %v2337_v5  ;;  %1505 = vmatpush1.bf16.msra.mxu1 %v2340_v6  ;;  %v2432_v5 = vld [vmem:[#allocation5 + $0x1ec] ss:$16 sps:$4 sm:$0xff]   ;;  %v2427_v6 = vld [vmem:[#allocation5 + $0x1e0] ss:$16 sps:$4 sm:$0xff]  }
 0x129   :  { %1420 = vmatprep.subr.bf16.mxu0 %v2345_v8  ;;  %1506 = vmatprep.subr.bf16.mxu1 %v2348_v9  ;;  %v2435_v8 = vld [vmem:[#allocation5 + $0x204] ss:$16 sps:$4 sm:$0xff]   ;;  %v2438_v9 = vld [vmem:[#allocation5 + $0x20c] ss:$16 sps:$4 sm:$0xff]  }
 0x12c   :  { %1421 = vmatpush1.bf16.msra.mxu0 %v2343_v58  ;;  %1507 = vmatpush1.bf16.msra.mxu1 %v2346_v11  ;;  %v376_v58 = vld [vmem:[%s2979_s4] sm:$0xf] }
 0x12d   :  { %1422 = vmatprep.subr.bf16.mxu0 %v2351_v12  ;;  %1508 = vmatprep.subr.bf16.mxu1 %v2354_v15  ;;  %v381_v11 = vrot.slane %v376_v58, %v2846_v26  ;;  %v389_v12 = vrot.slane %v376_v58, %v2854_v32  ;;  %v385_v15 = vrot.slane %v376_v58, %v2852_v31 }
 0x130   :  { %1423 = vmatpush1.bf16.msra.mxu0 %v2349_v59  ;;  %1509 = vmatpush1.bf16.msra.mxu1 %v2352_v10  ;;  %v393_v59 = vrot.slane %v376_v58, %v2859_v38 }
 0x131   :  { %1424 = vmatprep.subr.bf16.mxu0 %v2357_v17  ;;  %1510 = vmatprep.subr.bf16.mxu1 %v2360_v20 }
 0x134   :  { %1425 = vmatpush1.bf16.msra.mxu0 %v2355_v21  ;;  %1511 = vmatpush1.bf16.msra.mxu1 %v2358_v23 }
 0x135   :  { %1426 = vmatprep.subr.bf16.mxu0 %v2363_v25  ;;  %1512 = vmatprep.subr.bf16.mxu1 %v2366_v28 }
 0x138   :  { %1427 = vmatpush1.bf16.msra.mxu0 %v2361_v2  ;;  %1513 = vmatpush1.bf16.msra.mxu1 %v2364_v3 }
 0x139   :  { %1428 = vmatprep.subr.bf16.mxu0 %v2369_v22  ;;  %1514 = vmatprep.subr.bf16.mxu1 %v2372_v14 }
 0x13c   :  { %1429 = vmatpush1.bf16.msra.mxu0 %v2367_v24  ;;  %1515 = vmatpush1.bf16.msra.mxu1 %v2370_v13 }
 0x13d   :  { %1430 = vmatprep.subr.bf16.mxu0 %v2375_v16  ;;  %1516 = vmatprep.subr.bf16.mxu1 %v2378_v29 }
 0x140   :  { %1431 = vmatpush1.bf16.msra.mxu0 %v2373_v19  ;;  %1517 = vmatpush1.bf16.msra.mxu1 %v2376_v27 }
 0x141   :  { %1432 = vmatprep.subr.bf16.mxu0 %v2381_v30  ;;  %1518 = vmatprep.subr.bf16.mxu1 %v2384_v33 }
 0x144   :  { %1433 = vmatpush1.bf16.msra.mxu0 %v2379_v34  ;;  %1519 = vmatpush1.bf16.msra.mxu1 %v2382_v35 }
 0x145   :  { %1434 = vmatprep.subr.bf16.mxu0 %v2387_v36  ;;  %1520 = vmatprep.subr.bf16.mxu1 %v2390_v37 }
 0x148   :  { %1435 = vmatpush1.bf16.msra.mxu0 %v2385_v39  ;;  %1521 = vmatpush1.bf16.msra.mxu1 %v2388_v40 }
 0x149   :  { %1436 = vmatprep.subr.bf16.mxu0 %v2393_v60  ;;  %1522 = vmatprep.subr.bf16.mxu1 %v2396_v41 }
 0x14c   :  { %1437 = vmatpush1.bf16.msra.mxu0 %v2391_v42  ;;  %1523 = vmatpush1.bf16.msra.mxu1 %v2394_v44 }
 0x14d   :  { %1438 = vmatprep.subr.bf16.mxu0 %v2399_v45  ;;  %1524 = vmatprep.subr.bf16.mxu1 %v2402_v46 }
 0x150   :  { %1439 = vmatpush1.bf16.msra.mxu0 %v2397_v43  ;;  %1525 = vmatpush1.bf16.msra.mxu1 %v2400_v18 }
 0x151   :  { %1440 = vmatprep.subr.bf16.mxu0 %v2405_v47  ;;  %1526 = vmatprep.subr.bf16.mxu1 %v2408_v48 }
 0x154   :  { %1441 = vmatpush1.bf16.msra.mxu0 %v2403_v49  ;;  %1527 = vmatpush1.bf16.msra.mxu1 %v2406_v50 }
 0x155   :  { %1442 = vmatprep.subr.bf16.mxu0 %v2411_v51  ;;  %1528 = vmatprep.subr.bf16.mxu1 %v2414_v52 }
 0x158   :  { %1443 = vmatpush1.bf16.msra.mxu0 %v2409_v54  ;;  %1529 = vmatpush1.bf16.msra.mxu1 %v2412_v1 }
 0x159   :  { %1444 = vmatprep.subr.bf16.mxu0 %v2417_v53  ;;  %1530 = vmatprep.subr.bf16.mxu1 %v2420_v55 }
 0x15c   :  { %1445 = vmatpush1.bf16.msra.mxu0 %v2415_v56  ;;  %1531 = vmatpush1.bf16.msra.mxu1 %v2418_v57 }
 0x15d   :  { %1446 = vmatprep.subr.bf16.mxu0 %v2423_v61  ;;  %1532 = vmatprep.subr.bf16.mxu1 %v2426_v62 }
 0x160   :  { %1447 = vmatpush1.bf16.msra.mxu0 %v2421_v63  ;;  %1533 = vmatpush1.bf16.msra.mxu1 %v2424_v0 }
 0x161   :  { %1448 = vmatprep.subr.bf16.mxu0 %v2429_v4  ;;  %1534 = vmatprep.subr.bf16.mxu1 %v2432_v5 }
 0x164   :  { %1449 = vmatpush1.bf16.msra.mxu0 %v2427_v6  ;;  %1535 = vmatpush1.bf16.msra.mxu1 %v2430_v7 }
 0x165   :  { %1461 = vmatprep.subr.bf16.mxu0 %v2435_v8  ;;  %1547 = vmatprep.subr.bf16.mxu1 %v2438_v9 }
 0x1fa   :  { %v516_v10 = vpop.f32.mrb[0].mxu0  ;;  %v559_v17 = vpop.f32.mrb[0].mxu1 }
 0x1fb   :  { %v517_v20 = vadd.f32 %v516_v10, %v381_v11  ;;  %v560_v21 = vadd.f32 %v559_v17, %v389_v12  ;;  %v518_v23 = vpop.f32.mrb[1].mxu0  ;;  %v561_v25 = vpop.f32.mrb[1].mxu1  ;;  %v2436_v10 = vld [vmem:[#allocation5 + $0x208] ss:$16 sps:$4 sm:$0xff]  }
 0x1fc   :  { %v519_v28 = vadd.f32 %v518_v23, %v385_v15  ;;  %v2941_v2 = vadd.f32 %v561_v25, %v393_v59  ;;  %v520_v3 = vpop.f32.mrb[2].mxu0  ;;  %v563_v22 = vpop.f32.mrb[2].mxu1  ;;  %v2444_v23 = vld [vmem:[#allocation5 + $0x22c] ss:$16 sps:$4 sm:$0xff]   ;;  %v2442_v25 = vld [vmem:[#allocation5 + $0x228] ss:$16 sps:$4 sm:$0xff]  }
 0x1fd   :  { %v2042_v14 = vmul.f32 -1.442695, %v517_v20  ;;  %v2044_v24 = vmul.f32 -1.442695, %v560_v21  ;;  %v521_v13 = vadd.f32 %v520_v3, %v381_v11  ;;  %v564_v16 = vadd.f32 %v563_v22, %v389_v12  ;;  %v522_v29 = vpop.f32.mrb[3].mxu0  ;;  %v565_v19 = vpop.f32.mrb[3].mxu1 }
 0x1fe   :  { %v2043_v27 = vmul.f32 -1.442695, %v519_v28  ;;  %v2045_v30 = vmul.f32 -1.442695, %v2941_v2  ;;  %v523_v33 = vadd.f32 %v522_v29, %v385_v15  ;;  %v566_v34 = vadd.f32 %v565_v19, %v393_v59  ;;  %v2433_v59 = vld [vmem:[#allocation5 + $0x200] ss:$16 sps:$4 sm:$0xff]  }
 0x1ff   :  { %2569 = vpow2.f32 %v2042_v14  ;;  %v2046_v35 = vmul.f32 -1.442695, %v521_v13  ;;  %v2048_v36 = vmul.f32 -1.442695, %v564_v16  ;;  %v2445_v3 = vld [vmem:[#allocation5 + $0x240] ss:$16 sps:$4 sm:$0xff]  }
 0x200   :  { %2571 = vpow2.f32 %v2044_v24  ;;  %v2047_v37 = vmul.f32 -1.442695, %v523_v33  ;;  %v2049_v39 = vmul.f32 -1.442695, %v566_v34  ;;  %v2448_v22 = vld [vmem:[#allocation5 + $0x248] ss:$16 sps:$4 sm:$0xff]  }
 0x201   :  { %2573 = vpow2.f32 %v2043_v27  ;;  %v2453_v14 = vld [vmem:[#allocation5 + $0x264] ss:$16 sps:$4 sm:$0xff]   ;;  %v2456_v24 = vld [vmem:[#allocation5 + $0x26c] ss:$16 sps:$4 sm:$0xff]   ;;  %v2457_v27 = vld [vmem:[#allocation5 + $0x280] ss:$16 sps:$4 sm:$0xff]  }
 0x202   :  { %2575 = vpow2.f32 %v2045_v30  ;;  %v2459_v29 = vld [vmem:[#allocation5 + $0x284] ss:$16 sps:$4 sm:$0xff]   ;;  %v2462_v19 = vld [vmem:[#allocation5 + $0x28c] ss:$16 sps:$4 sm:$0xff]   ;;  %v2460_v30 = vld [vmem:[#allocation5 + $0x288] ss:$16 sps:$4 sm:$0xff]  }
 0x203   :  { %2577 = vpow2.f32 %v2046_v35  ;;  %v2463_v35 = vld [vmem:[#allocation5 + $0x2a0] ss:$16 sps:$4 sm:$0xff]  }
 0x204   :  { %2579 = vpow2.f32 %v2048_v36  ;;  %v2466_v36 = vld [vmem:[#allocation5 + $0x2a8] ss:$16 sps:$4 sm:$0xff]  }
 0x205   :  { %2581 = vpow2.f32 %v2047_v37  ;;  %v2471_v37 = vld [vmem:[#allocation5 + $0x2c4] ss:$16 sps:$4 sm:$0xff]  }
 0x206   :  { %2583 = vpow2.f32 %v2049_v39  ;;  %v2474_v39 = vld [vmem:[#allocation5 + $0x2cc] ss:$16 sps:$4 sm:$0xff]  }
 0x209   :  { %v2570_v40 = vpop.eup %2569 }
 0x20a   :  { %v2572_v60 = vpop.eup %2571  ;;  %v592_v41 = vadd.f32 1.0, %v2570_v40  ;;  %v2469_v40 = vld [vmem:[#allocation5 + $0x2c0] ss:$16 sps:$4 sm:$0xff]  }
 0x20b   :  { %v2574_v42 = vpop.eup %2573  ;;  %v594_v44 = vadd.f32 1.0, %v2572_v60  ;;  %v2472_v60 = vld [vmem:[#allocation5 + $0x2c8] ss:$16 sps:$4 sm:$0xff]  }
 0x20c   :  { %v2576_v45 = vpop.eup %2575  ;;  %2585 = vrcp.f32 %v592_v41  ;;  %v593_v46 = vadd.f32 1.0, %v2574_v42  ;;  %v2477_v41 = vld [vmem:[#allocation5 + $0x2e4] ss:$16 sps:$4 sm:$0xff]   ;;  %v2480_v42 = vld [vmem:[#allocation5 + $0x2ec] ss:$16 sps:$4 sm:$0xff]  }
 0x20d   :  { %v2578_v43 = vpop.eup %2577  ;;  %2587 = vrcp.f32 %v594_v44  ;;  %v595_v18 = vadd.f32 1.0, %v2576_v45  ;;  %v2475_v44 = vld [vmem:[#allocation5 + $0x2e0] ss:$16 sps:$4 sm:$0xff]   ;;  %v2478_v45 = vld [vmem:[#allocation5 + $0x2e8] ss:$16 sps:$4 sm:$0xff]  }
 0x20e   :  { %v2580_v47 = vpop.eup %2579  ;;  %2589 = vrcp.f32 %v593_v46  ;;  %v596_v48 = vadd.f32 1.0, %v2578_v43  ;;  %v2483_v46 = vld [vmem:[#allocation5 + $0x304] ss:$16 sps:$4 sm:$0xff]   ;;  %v2486_v43 = vld [vmem:[#allocation5 + $0x30c] ss:$16 sps:$4 sm:$0xff]  }
 0x20f   :  { %v2582_v49 = vpop.eup %2581  ;;  %2591 = vrcp.f32 %v595_v18  ;;  %v598_v50 = vadd.f32 1.0, %v2580_v47  ;;  %v2481_v18 = vld [vmem:[#allocation5 + $0x300] ss:$16 sps:$4 sm:$0xff]   ;;  %v2484_v47 = vld [vmem:[#allocation5 + $0x308] ss:$16 sps:$4 sm:$0xff]  }
 0x210   :  { %v2584_v51 = vpop.eup %2583  ;;  %2593 = vrcp.f32 %v596_v48  ;;  %v597_v52 = vadd.f32 1.0, %v2582_v49  ;;  %v2489_v48 = vld [vmem:[#allocation5 + $0x324] ss:$16 sps:$4 sm:$0xff]   ;;  %v2492_v49 = vld [vmem:[#allocation5 + $0x32c] ss:$16 sps:$4 sm:$0xff]  }
 0x211   :  { %2595 = vrcp.f32 %v598_v50  ;;  %v599_v54 = vadd.f32 1.0, %v2584_v51  ;;  %v2487_v50 = vld [vmem:[#allocation5 + $0x320] ss:$16 sps:$4 sm:$0xff]   ;;  %v2490_v51 = vld [vmem:[#allocation5 + $0x328] ss:$16 sps:$4 sm:$0xff]  }
 0x212   :  { %2597 = vrcp.f32 %v597_v52  ;;  %v2495_v52 = vld [vmem:[#allocation5 + $0x344] ss:$16 sps:$4 sm:$0xff]  }
 0x213   :  { %2599 = vrcp.f32 %v599_v54  ;;  %v2498_v54 = vld [vmem:[#allocation5 + $0x34c] ss:$16 sps:$4 sm:$0xff]  }
 0x216   :  { %v2586_v1 = vpop.eup %2585 }
 0x217   :  { %v2588_v53 = vpop.eup %2587  ;;  %v616_v62 = vmul.f32 %v2586_v1, %v517_v20  ;;  %v2441_v20 = vld [vmem:[#allocation5 + $0x224] ss:$16 sps:$4 sm:$0xff]   ;;  %v2493_v1 = vld [vmem:[#allocation5 + $0x340] ss:$16 sps:$4 sm:$0xff]  }
 0x218   :  { %v2590_v55 = vpop.eup %2589  ;;  %v618_v4 = vmul.f32 %v2588_v53, %v560_v21  ;;  %v2439_v21 = vld [vmem:[#allocation5 + $0x220] ss:$16 sps:$4 sm:$0xff]   ;;  %v2496_v53 = vld [vmem:[#allocation5 + $0x348] ss:$16 sps:$4 sm:$0xff]  }
 0x219   :  { %v2592_v56 = vpop.eup %2591  ;;  %v617_v7 = vmul.f32 %v2590_v55, %v519_v28  ;;  %v2447_v28 = vld [vmem:[#allocation5 + $0x244] ss:$16 sps:$4 sm:$0xff]  }
 0x21a   :  { %v2594_v57 = vpop.eup %2593  ;;  %v619_v58 = vmul.f32 %v2592_v56, %v2941_v2  ;;  %v2450_v2 = vld [vmem:[#allocation5 + $0x24c] ss:$16 sps:$4 sm:$0xff]   ;;  %v2501_v55 = vld [vmem:[#allocation5 + $0x364] ss:$16 sps:$4 sm:$0xff]  }
 0x21b   :  { %v2596_v61 = vpop.eup %2595  ;;  %v620_v63 = vmul.f32 %v2594_v57, %v521_v13  ;;  %v2451_v13 = vld [vmem:[#allocation5 + $0x260] ss:$16 sps:$4 sm:$0xff]   ;;  %v2504_v56 = vld [vmem:[#allocation5 + $0x36c] ss:$16 sps:$4 sm:$0xff]  }
 0x21c   :  { %v2598_v0 = vpop.eup %2597  ;;  %v622_v5 = vmul.f32 %v2596_v61, %v564_v16  ;;  %v2454_v16 = vld [vmem:[#allocation5 + $0x268] ss:$16 sps:$4 sm:$0xff]   ;;  %v2499_v57 = vld [vmem:[#allocation5 + $0x360] ss:$16 sps:$4 sm:$0xff]  }
 0x21d   :  { %v2600_v6 = vpop.eup %2599  ;;  %v624_v8 = vpack.c.bf16 %v620_v63, %v616_v62  ;;  %v621_v9 = vmul.f32 %v2598_v0, %v523_v33  ;;  %v2465_v33 = vld [vmem:[#allocation5 + $0x2a4] ss:$16 sps:$4 sm:$0xff]   ;;  %v2502_v61 = vld [vmem:[#allocation5 + $0x368] ss:$16 sps:$4 sm:$0xff]   ;;  %v2510_v63 = vld [vmem:[#allocation5 + $0x38c] ss:$16 sps:$4 sm:$0xff]  }
 0x21e   :  { %v2945_v11 = vpack.c.bf16 %v622_v5, %v618_v4  ;;  %v623_v12 = vmul.f32 %v2600_v6, %v566_v34  ;;  %v2468_v34 = vld [vmem:[#allocation5 + $0x2ac] ss:$16 sps:$4 sm:$0xff]   ;;  %v2507_v62 = vld [vmem:[#allocation5 + $0x384] ss:$16 sps:$4 sm:$0xff]   ;;  %v2505_v0 = vld [vmem:[#allocation5 + $0x380] ss:$16 sps:$4 sm:$0xff]  }
 0x21f   :  { %v625_v15 = vpack.c.bf16 %v621_v9, %v617_v7  ;;  %v2508_v4 = vld [vmem:[#allocation5 + $0x388] ss:$16 sps:$4 sm:$0xff]   ;;  %v2513_v5 = vld [vmem:[#allocation5 + $0x3a4] ss:$16 sps:$4 sm:$0xff]   ;;  %v2516_v6 = vld [vmem:[#allocation5 + $0x3ac] ss:$16 sps:$4 sm:$0xff]  }
 0x220   :  { %v627_v17 = vpack.c.bf16 %v623_v12, %v619_v58  ;;  %v2511_v7 = vld [vmem:[#allocation5 + $0x3a0] ss:$16 sps:$4 sm:$0xff]   ;;  %v2519_v9 = vld [vmem:[#allocation5 + $0x3c4] ss:$16 sps:$4 sm:$0xff]   ;;  %v2522_v58 = vld [vmem:[#allocation5 + $0x3cc] ss:$16 sps:$4 sm:$0xff]  }
 0x221   :  { %1450 = vmatprep.mubr.bf16.mxu0 %v625_v15  ;;  %1536 = vmatprep.mubr.bf16.mxu1 %v625_v15  ;;  %v2517_v12 = vld [vmem:[#allocation5 + $0x3c0] ss:$16 sps:$4 sm:$0xff]   ;;  %v2520_v15 = vld [vmem:[#allocation5 + $0x3c8] ss:$16 sps:$4 sm:$0xff]  }
 0x222   :  { %1451 = vmatmul.mubr.bf16.vlgmr.msra.gmra.mrb[4].mxu0 %v624_v8  ;;  %1537 = vmatmul.mubr.bf16.vlgmr.msra.gmra.mrb[4].mxu1 %v624_v8  ;;  %v2514_v8 = vld [vmem:[#allocation5 + $0x3a8] ss:$16 sps:$4 sm:$0xff]  }
 0x223   :  { %1462 = vmatpush1.bf16.msra.mxu0 %v2433_v59  ;;  %1548 = vmatpush1.bf16.msra.mxu1 %v2436_v10  ;;  %v2525_v59 = vld [vmem:[#allocation5 + $0x3e4] ss:$16 sps:$4 sm:$0xff]   ;;  %v2528_v10 = vld [vmem:[#allocation5 + $0x3ec] ss:$16 sps:$4 sm:$0xff]  }
 0x224   :  { %1493 = vmatprep.mubr.bf16.mxu0 %v627_v17  ;;  %1579 = vmatprep.mubr.bf16.mxu1 %v627_v17  ;;  %v2523_v17 = vld [vmem:[#allocation5 + $0x3e0] ss:$16 sps:$4 sm:$0xff]  }
 0x225   :  { %1463 = vmatprep.subr.bf16.mxu0 %v2441_v20  ;;  %1549 = vmatprep.subr.bf16.mxu1 %v2444_v23  ;;  %v2526_v20 = vld [vmem:[#allocation5 + $0x3e8] ss:$16 sps:$4 sm:$0xff]   ;;  %v2529_v23 = vld [vmem:[#allocation7 + $0x40] sm:$0xff]  }
 0x227   :  { %1464 = vmatpush1.bf16.msra.mxu0 %v2439_v21  ;;  %1550 = vmatpush1.bf16.msra.mxu1 %v2442_v25  ;;  %v2530_v21 = vld [vmem:[#allocation7 + $0xc0] sm:$0xff]  }
 0x228   :  { %1465 = vmatprep.subr.bf16.mxu0 %v2447_v28  ;;  %1551 = vmatprep.subr.bf16.mxu1 %v2450_v2  ;;  %v2531_v25 = vld [vmem:[#allocation7] sm:$0xff]   ;;  %v2533_v2 = vld [vmem:[#allocation7 + $0x48] sm:$0xff]  }
 0x229   :  { %v2532_v28 = vld [vmem:[#allocation7 + $0x80] sm:$0xff]  }
 0x22b   :  { %1466 = vmatpush1.bf16.msra.mxu0 %v2445_v3  ;;  %1552 = vmatpush1.bf16.msra.mxu1 %v2448_v22  ;;  %v2534_v3 = vld [vmem:[#allocation7 + $0xc8] sm:$0xff]  }
 0x22c   :  { %1467 = vmatprep.subr.bf16.mxu0 %v2453_v14  ;;  %1553 = vmatprep.subr.bf16.mxu1 %v2456_v24  ;;  %v2535_v22 = vld [vmem:[#allocation7 + $0x8] sm:$0xff]   ;;  %v2537_v24 = vld [vmem:[#allocation7 + $0x50] sm:$0xff]  }
 0x22d   :  { %v2536_v14 = vld [vmem:[#allocation7 + $0x88] sm:$0xff]  }
 0x22f   :  { %1468 = vmatpush1.bf16.msra.mxu0 %v2451_v13  ;;  %1554 = vmatpush1.bf16.msra.mxu1 %v2454_v16  ;;  %v2538_v13 = vld [vmem:[#allocation7 + $0xd0] sm:$0xff]  }
 0x230   :  { %1469 = vmatprep.subr.bf16.mxu0 %v2459_v29  ;;  %1555 = vmatprep.subr.bf16.mxu1 %v2462_v19  ;;  %v2539_v16 = vld [vmem:[#allocation7 + $0x10] sm:$0xff]   ;;  %v2541_v29 = vld [vmem:[#allocation7 + $0x58] sm:$0xff]  }
 0x231   :  { %v2542_v19 = vld [vmem:[#allocation7 + $0xd8] sm:$0xff]  }
 0x233   :  { %1470 = vmatpush1.bf16.msra.mxu0 %v2457_v27  ;;  %1556 = vmatpush1.bf16.msra.mxu1 %v2460_v30  ;;  %v2543_v27 = vld [vmem:[#allocation7 + $0x18] sm:$0xff]  }
 0x234   :  { %1471 = vmatprep.subr.bf16.mxu0 %v2465_v33  ;;  %1557 = vmatprep.subr.bf16.mxu1 %v2468_v34  ;;  %v2544_v30 = vld [vmem:[#allocation7 + $0x98] sm:$0xff]   ;;  %v2545_v33 = vld [vmem:[#allocation7 + $0x60] sm:$0xff]  }
 0x235   :  { %v2546_v34 = vld [vmem:[#allocation7 + $0xe0] sm:$0xff]  }
 0x237   :  { %1472 = vmatpush1.bf16.msra.mxu0 %v2463_v35  ;;  %1558 = vmatpush1.bf16.msra.mxu1 %v2466_v36  ;;  %v2547_v35 = vld [vmem:[#allocation7 + $0x20] sm:$0xff]  }
 0x238   :  { %1473 = vmatprep.subr.bf16.mxu0 %v2471_v37  ;;  %1559 = vmatprep.subr.bf16.mxu1 %v2474_v39  ;;  %v2548_v36 = vld [vmem:[#allocation7 + $0xa0] sm:$0xff]   ;;  %v2549_v37 = vld [vmem:[#allocation7 + $0x68] sm:$0xff]  }
 0x239   :  { %v2550_v39 = vld [vmem:[#allocation7 + $0xe8] sm:$0xff]  }
 0x23b   :  { %1474 = vmatpush1.bf16.msra.mxu0 %v2469_v40  ;;  %1560 = vmatpush1.bf16.msra.mxu1 %v2472_v60  ;;  %v2551_v40 = vld [vmem:[#allocation7 + $0x28] sm:$0xff]  }
 0x23c   :  { %1475 = vmatprep.subr.bf16.mxu0 %v2477_v41  ;;  %1561 = vmatprep.subr.bf16.mxu1 %v2480_v42  ;;  %v2552_v60 = vld [vmem:[#allocation7 + $0xa8] sm:$0xff]   ;;  %v2553_v41 = vld [vmem:[#allocation7 + $0x70] sm:$0xff]  }
 0x23d   :  { %v2554_v42 = vld [vmem:[#allocation7 + $0xf0] sm:$0xff]  }
 0x23f   :  { %1476 = vmatpush1.bf16.msra.mxu0 %v2475_v44  ;;  %1562 = vmatpush1.bf16.msra.mxu1 %v2478_v45  ;;  %v2555_v44 = vld [vmem:[#allocation7 + $0x30] sm:$0xff]  }
 0x240   :  { %1477 = vmatprep.subr.bf16.mxu0 %v2483_v46  ;;  %1563 = vmatprep.subr.bf16.mxu1 %v2486_v43  ;;  %v2556_v45 = vld [vmem:[#allocation7 + $0xb0] sm:$0xff]   ;;  %v2557_v46 = vld [vmem:[#allocation7 + $0x78] sm:$0xff]  }
 0x241   :  { %v2558_v43 = vld [vmem:[#allocation7 + $0xf8] sm:$0xff]  }
 0x243   :  { %1478 = vmatpush1.bf16.msra.mxu0 %v2481_v18  ;;  %1564 = vmatpush1.bf16.msra.mxu1 %v2484_v47  ;;  %v2559_v18 = vld [vmem:[#allocation7 + $0x38] sm:$0xff]  }
 0x244   :  { %1479 = vmatprep.subr.bf16.mxu0 %v2489_v48  ;;  %1565 = vmatprep.subr.bf16.mxu1 %v2492_v49  ;;  %v2560_v47 = vld [vmem:[#allocation7 + $0xb8] sm:$0xff]  }
 0x245   :  { %v756_v48 = vld [vmem:[%s2981_s6] sm:$0xf] }
 0x246   :  { %v761_v49 = vrot.slane %v756_v48, %v2846_v26 }
 0x247   :  { %1480 = vmatpush1.bf16.msra.mxu0 %v2487_v50  ;;  %1566 = vmatpush1.bf16.msra.mxu1 %v2490_v51  ;;  %v769_v50 = vrot.slane %v756_v48, %v2854_v32  ;;  %v765_v51 = vrot.slane %v756_v48, %v2852_v31 }
 0x248   :  { %1481 = vmatprep.subr.bf16.mxu0 %v2495_v52  ;;  %1567 = vmatprep.subr.bf16.mxu1 %v2498_v54  ;;  %v773_v52 = vrot.slane %v756_v48, %v2859_v38 }
 0x24b   :  { %1482 = vmatpush1.bf16.msra.mxu0 %v2493_v1  ;;  %1568 = vmatpush1.bf16.msra.mxu1 %v2496_v53 }
 0x24c   :  { %1483 = vmatprep.subr.bf16.mxu0 %v2501_v55  ;;  %1569 = vmatprep.subr.bf16.mxu1 %v2504_v56 }
 0x24f   :  { %1484 = vmatpush1.bf16.msra.mxu0 %v2499_v57  ;;  %1570 = vmatpush1.bf16.msra.mxu1 %v2502_v61 }
 0x250   :  { %1485 = vmatprep.subr.bf16.mxu0 %v2507_v62  ;;  %1571 = vmatprep.subr.bf16.mxu1 %v2510_v63 }
 0x253   :  { %1486 = vmatpush1.bf16.msra.mxu0 %v2505_v0  ;;  %1572 = vmatpush1.bf16.msra.mxu1 %v2508_v4 }
 0x254   :  { %1487 = vmatprep.subr.bf16.mxu0 %v2513_v5  ;;  %1573 = vmatprep.subr.bf16.mxu1 %v2516_v6 }
 0x257   :  { %1488 = vmatpush1.bf16.msra.mxu0 %v2511_v7  ;;  %1574 = vmatpush1.bf16.msra.mxu1 %v2514_v8 }
 0x258   :  { %1489 = vmatprep.subr.bf16.mxu0 %v2519_v9  ;;  %1575 = vmatprep.subr.bf16.mxu1 %v2522_v58 }
 0x25b   :  { %1490 = vmatpush1.bf16.msra.mxu0 %v2517_v12  ;;  %1576 = vmatpush1.bf16.msra.mxu1 %v2520_v15 }
 0x25c   :  { %1491 = vmatprep.subr.bf16.mxu0 %v2525_v59  ;;  %1577 = vmatprep.subr.bf16.mxu1 %v2528_v10 }
 0x25f   :  { %1492 = vmatpush1.bf16.msra.mxu0 %v2523_v17  ;;  %1578 = vmatpush1.bf16.msra.mxu1 %v2526_v20 }
 0x260   :  { %2219 = vmatprep.subr.bf16.mxu0 %v2529_v23  ;;  %2241 = vmatprep.subr.bf16.mxu1 %v2530_v21 }
 0x262   :  { %1494 = vmatmul.mubr.bf16.vlgmr.msra.gmra.mrb[4].mxu0 %v2945_v11  ;;  %1580 = vmatmul.mubr.bf16.vlgmr.msra.gmra.mrb[4].mxu1 %v2945_v11  ;;  %v2540_v11 = vld [vmem:[#allocation7 + $0x90] sm:$0xff]  }
 0x263   :  { %2220 = vmatpush3.bf16.msra.mxu0 %v2531_v25  ;;  %2242 = vmatpush3.bf16.msra.mxu1 %v2532_v28 }
 0x264   :  { %2221 = vmatprep.subr.bf16.mxu0 %v2533_v2  ;;  %2243 = vmatprep.subr.bf16.mxu1 %v2534_v3 }
 0x267   :  { %2222 = vmatpush3.bf16.msra.mxu0 %v2535_v22  ;;  %2244 = vmatpush3.bf16.msra.mxu1 %v2536_v14 }
 0x268   :  { %2223 = vmatprep.subr.bf16.mxu0 %v2537_v24  ;;  %2245 = vmatprep.subr.bf16.mxu1 %v2538_v13 }
 0x26b   :  { %2224 = vmatpush3.bf16.msra.mxu0 %v2539_v16  ;;  %2246 = vmatpush3.bf16.msra.mxu1 %v2540_v11 }
 0x26c   :  { %2225 = vmatprep.subr.bf16.mxu0 %v2541_v29  ;;  %2247 = vmatprep.subr.bf16.mxu1 %v2542_v19 }
 0x26f   :  { %2226 = vmatpush3.bf16.msra.mxu0 %v2543_v27  ;;  %2248 = vmatpush3.bf16.msra.mxu1 %v2544_v30 }
 0x270   :  { %2227 = vmatprep.subr.bf16.mxu0 %v2545_v33  ;;  %2249 = vmatprep.subr.bf16.mxu1 %v2546_v34 }
 0x273   :  { %2228 = vmatpush3.bf16.msra.mxu0 %v2547_v35  ;;  %2250 = vmatpush3.bf16.msra.mxu1 %v2548_v36 }
 0x274   :  { %2229 = vmatprep.subr.bf16.mxu0 %v2549_v37  ;;  %2251 = vmatprep.subr.bf16.mxu1 %v2550_v39 }
 0x277   :  { %2230 = vmatpush3.bf16.msra.mxu0 %v2551_v40  ;;  %2252 = vmatpush3.bf16.msra.mxu1 %v2552_v60 }
 0x278   :  { %2231 = vmatprep.subr.bf16.mxu0 %v2553_v41  ;;  %2253 = vmatprep.subr.bf16.mxu1 %v2554_v42 }
 0x27b   :  { %2232 = vmatpush3.bf16.msra.mxu0 %v2555_v44  ;;  %2254 = vmatpush3.bf16.msra.mxu1 %v2556_v45 }
 0x27c   :  { %2233 = vmatprep.subr.bf16.mxu0 %v2557_v46  ;;  %2255 = vmatprep.subr.bf16.mxu1 %v2558_v43 }
 0x27f   :  { %2234 = vmatpush3.bf16.msra.mxu0 %v2559_v18  ;;  %2256 = vmatpush3.bf16.msra.mxu1 %v2560_v47 }
 0x335   :  { %v1495_v54 = vpop.f32.mrb[4].mxu0  ;;  %v1581_v1 = vpop.f32.mrb[4].mxu1 }
 0x336   :  { %v2263_v53 = vadd.f32 %v1495_v54, %v761_v49  ;;  %v2267_v55 = vadd.f32 %v1581_v1, %v769_v50  ;;  %v1497_v56 = vpop.f32.mrb[5].mxu0  ;;  %v1583_v57 = vpop.f32.mrb[5].mxu1 }
 0x337   :  { %v2264_v61 = vadd.f32 %v1497_v56, %v765_v51  ;;  %v2956_v62 = vadd.f32 %v1583_v57, %v773_v52  ;;  %v1499_v63 = vpop.f32.mrb[6].mxu0  ;;  %v1585_v0 = vpop.f32.mrb[6].mxu1 }
 0x338   :  { %v2178_v4 = vmul.f32 -1.442695, %v2263_v53  ;;  %v2180_v5 = vmul.f32 -1.442695, %v2267_v55  ;;  %v2265_v26 = vadd.f32 %v1499_v63, %v761_v49  ;;  %v2269_v6 = vadd.f32 %v1585_v0, %v769_v50  ;;  %v1501_v32 = vpop.f32.mrb[7].mxu0  ;;  %v1587_v7 = vpop.f32.mrb[7].mxu1 }
 0x339   :  { %v2179_v31 = vmul.f32 -1.442695, %v2264_v61  ;;  %v2181_v38 = vmul.f32 -1.442695, %v2956_v62  ;;  %v2266_v8 = vadd.f32 %v1501_v32, %v765_v51  ;;  %v2270_v9 = vadd.f32 %v1587_v7, %v773_v52  ;;  %v2186_v51 = vld [vmem:[%s2983_s8] ss:$0 sm:$0xff] }
 0x33a   :  { %2601 = vpow2.f32 %v2178_v4  ;;  %v2182_v58 = vmul.f32 -1.442695, %v2265_v26  ;;  %v2184_v12 = vmul.f32 -1.442695, %v2269_v6  ;;  %s2699_s8 = scalar_lea.vmem %s2003_s14, 256 }
 0x33b   :  { %2603 = vpow2.f32 %v2180_v5  ;;  %v2183_v15 = vmul.f32 -1.442695, %v2266_v8  ;;  %v2185_v59 = vmul.f32 -1.442695, %v2270_v9  ;;  %p2700_p10 = scmp.ne.s32.totalorder %s2003_s14, %s2699_s8  ;;  %p2705_p12 = scmp.lt.s32.totalorder %s2699_s8, %s2699_s8 }
 0x33c   :  { %2605 = vpow2.f32 %v2179_v31 }
 0x33d   :  { %2607 = vpow2.f32 %v2181_v38  ;;  %p2706_p13 = por %p2705_p12, %p2704_p11 }
 0x33e   :  { %2609 = vpow2.f32 %v2182_v58 }
 0x33f   :  { %2611 = vpow2.f32 %v2184_v12  ;;  %p2707_p0 = pnand %p2706_p13, %p2700_p10 }
 0x340   :  { %2613 = vpow2.f32 %v2183_v15 }
 0x341   :  { %2615 = vpow2.f32 %v2185_v59 }
 0x344   :  { %v2602_v10 = vpop.eup %2601 }
 0x345   :  { %v2604_v17 = vpop.eup %2603  ;;  %v1614_v20 = vadd.f32 1.0, %v2602_v10 }
 0x346   :  { %v2606_v23 = vpop.eup %2605  ;;  %v1616_v21 = vadd.f32 1.0, %v2604_v17 }
 0x347   :  { %v2608_v25 = vpop.eup %2607  ;;  %2617 = vrcp.f32 %v1614_v20  ;;  %v1615_v28 = vadd.f32 1.0, %v2606_v23 }
 0x348   :  { %v2610_v2 = vpop.eup %2609  ;;  %2619 = vrcp.f32 %v1616_v21  ;;  %v1617_v3 = vadd.f32 1.0, %v2608_v25 }
 0x349   :  { %v2612_v22 = vpop.eup %2611  ;;  %2621 = vrcp.f32 %v1615_v28  ;;  %v1618_v14 = vadd.f32 1.0, %v2610_v2 }
 0x34a   :  { %v2614_v24 = vpop.eup %2613  ;;  %2623 = vrcp.f32 %v1617_v3  ;;  %v1620_v13 = vadd.f32 1.0, %v2612_v22 }
 0x34b   :  { %v2616_v16 = vpop.eup %2615  ;;  %2625 = vrcp.f32 %v1618_v14  ;;  %v1619_v11 = vadd.f32 1.0, %v2614_v24 }
 0x34c   :  { %2627 = vrcp.f32 %v1620_v13  ;;  %v1621_v29 = vadd.f32 1.0, %v2616_v16 }
 0x34d   :  { %2629 = vrcp.f32 %v1619_v11 }
 0x34e   :  { %2631 = vrcp.f32 %v1621_v29 }
 0x351   :  { %v2618_v19 = vpop.eup %2617 }
 0x352   :  { %v2620_v27 = vpop.eup %2619  ;;  %v1638_v36 = vmul.f32 %v2618_v19, %v2263_v53 }
 0x353   :  { %v2622_v30 = vpop.eup %2621  ;;  %v1640_v40 = vmul.f32 %v2620_v27, %v2267_v55 }
 0x354   :  { %v2624_v33 = vpop.eup %2623  ;;  %v1639_v42 = vmul.f32 %v2622_v30, %v2264_v61 }
 0x355   :  { %v2626_v34 = vpop.eup %2625  ;;  %v1641_v46 = vmul.f32 %v2624_v33, %v2956_v62 }
 0x356   :  { %v2628_v35 = vpop.eup %2627  ;;  %v1642_v37 = vmul.f32 %v2626_v34, %v2265_v26 }
 0x357   :  { %v2630_v39 = vpop.eup %2629  ;;  %v1644_v60 = vmul.f32 %v2628_v35, %v2269_v6 }
 0x358   :  { %v2632_v41 = vpop.eup %2631  ;;  %v1646_v44 = vpack.c.bf16 %v1642_v37, %v1638_v36  ;;  %v1643_v45 = vmul.f32 %v2630_v39, %v2266_v8 }
 0x359   :  { %v1648_v43 = vpack.c.bf16 %v1644_v60, %v1640_v40  ;;  %v1645_v18 = vmul.f32 %v2632_v41, %v2270_v9 }
 0x35a   :  { %v1647_v47 = vpack.c.bf16 %v1643_v45, %v1639_v42 }
 0x35b   :  { %v1649_v48 = vpack.c.bf16 %v1645_v18, %v1641_v46 }
 0x35c   :  { %1945 = vmatprep.mubr.bf16.mxu0 %v1647_v47 }
 0x35d   :  { %1986 = vmatprep.mubr.bf16.mxu1 %v1649_v48  ;;  %1946 = vmatmul.mubr.bf16.vlgmr.msra.gmra.mrb[8].mxu0 %v1646_v44 }
 0x35e   :  { %1987 = vmatmul.mubr.bf16.vlgmr.msra.gmra.mrb[8].mxu1 %v1648_v43 }
 0x430   :  { %v2235_v49 = vpop.f32.mrb[8].mxu0 }
 0x431   :  { %v2257_v50 = vpop.f32.mrb[8].mxu1  ;;  %v2236_v52 = vpop.f32.mrb[9].mxu0 }
 0x432   :  { %v2237_v54 = vadd.f32 %v2236_v52, %v2235_v49  ;;  %v2258_v1 = vpop.f32.mrb[9].mxu1  ;;  %v2238_v53 = vpop.f32.mrb[10].mxu0 }
 0x433   :  { %v2259_v55 = vadd.f32 %v2258_v1, %v2257_v50  ;;  %v2260_v56 = vpop.f32.mrb[10].mxu1  ;;  %v2239_v57 = vpop.f32.mrb[11].mxu0 }
 0x434   :  { %v1948_v61 = vadd.f32 %v2237_v54, %v2186_v51  ;;  %v2240_v62 = vadd.f32 %v2239_v57, %v2238_v53  ;;  %v2261_v63 = vpop.f32.mrb[11].mxu1 }
 0x435   :  { %v2262_v0 = vadd.f32 %v2261_v63, %v2260_v56 }
 0x436   :  { %v1989_v4 = vadd.f32 %v2259_v55, %v1948_v61  ;;  %v1951_v5 = vadd.f32 %v2240_v62, %v2186_v51 }
 0x438   :  { %1995 = vst [vmem:[#allocation8] sm:$0xff] %v1989_v4  ;;  %v1992_v26 = vadd.f32 %v2262_v0, %v1951_v5 }
 0x43a   :  { %1996 = vst [vmem:[#allocation8 + $0x8] sm:$0xff] %v1992_v26 }
 0x43b   :  { %2710 = shalt.err (!%p2707_p0)
}
 0x43c   :  { %s2711_s17 = scalar_lea.hbm %s2984_s9, 256 }
 0x43d   :  { %p2712_p1 = scmp.ne.s32.totalorder %s2984_s9, %s2711_s17  ;;  %p2715_p2 = scmp.lt.u32.totalorder %s2711_s17, %s2984_s9 }
 0x43f   :  { %p2717_p3 = pnand %p2715_p2, %p2712_p1 }
 0x441   :  { %2720 = shalt.err (!%p2717_p3)
}
 0x442   :  { %s2745_s24 = smov 128   ;;  %s2746_s25 = smov 8  }
 0x443   :  { %2008 = dma.vmem_to_hbm [thread:$0]  %s2003_s14, 256, %s2984_s9, [#allocation4], %s2745_s24, %s2745_s24, %s2746_s25  }
 0x444   :  { %2725 = dma.done.wait [#allocation4], 256  }
 0x445   :  { %2726 = vsyncadd [#allocation4], 4294967040 }
 0x446   :  { %2012 = vsyncpa [#allocation3], 1 }
 0x447   :  { %2013 = vsyncpa [#allocation6], 1 }
 0x448   :  { %2014 = vsyncpa [#allocation4], 1 }

</bundles_post_ra>
